<compile_context>
chip_gen: v5e
topology: v5e:2x2
jax: 0.10.0
libtpu: 0.0.40
codegen_flags: <defaults>
</compile_context>

<pallas_src>
import numpy as np
import jax
import jax.numpy as jnp
from jax.experimental import pallas as pl
from jax.experimental.pallas import tpu as pltpu

# ---- config (mirrors the torch config object) ----
BATCH = 2
SEQ = 16                 # power of two -> deterministic flip indices (no random-bias branch)
HIDDEN = 32
HEADS = 4                # heads <= ceil(log2(SEQ)) -> deterministic branch of FlipSelfAttention
HEAD_DIM = HIDDEN // HEADS
INTER = 64
LAYERS = 2
MAX_POS = 32
LN_EPS = 1e-12
INIT_RANGE = 0.02


# ---------------- shared math helpers (used in-kernel and in the JAX reference) ---------------
def _layernorm(x, g, b):
    mu = jnp.mean(x, axis=-1, keepdims=True)
    var = jnp.mean((x - mu) ** 2, axis=-1, keepdims=True)
    return (x - mu) * jax.lax.rsqrt(var + LN_EPS) * g + b


def _gelu(x):
    # TODO(synk): BertIntermediate's activation is config-dependent (ACT2FN); using the
    # tanh-approx GELU ("gelu_new") since exact erf has no clean Mosaic lowering.
    c = 0.7978845608028654  # sqrt(2/pi)
    return 0.5 * x * (1.0 + jnp.tanh(c * (x + 0.044715 * x * x * x)))


# ---------------- flip-permutation construction (deterministic, numpy, trace-time) ------------
def build_flip_tables(seq_len, num_heads, batch):
    pad_len = int(2 ** np.ceil(np.log2(seq_len)))
    assert pad_len == seq_len, "seq_len must be a power of two for this kernel"
    log_len = int(np.ceil(np.log2(seq_len)))
    assert num_heads <= log_len, "choose heads <= ceil(log2(seq_len)) (deterministic branch)"
    eye = np.eye(pad_len, dtype=np.float32)
    idx = np.arange(pad_len)
    perms = []
    for i in range(num_heads):
        pp = int(2 ** (log_len - 1 - i))
        temp = idx.reshape(pp, pad_len // pp)
        flip = np.flip(temp % pad_len, axis=-1).flatten()
        perms.append(eye[flip])                 # row s picks column flip[s]
    perm = np.stack(perms, axis=0)              # (H, S, S) -- used by the JAX reference

    # Batched, block-diagonal stacked operator:
    #   fliper_flat = pc_b @ (tile(K_flat, H) * hm_b)
    bs = batch * seq_len
    pc_b = np.zeros((bs, num_heads * bs), dtype=np.float32)
    for h in range(num_heads):
        for b in range(batch):
            r0 = b * seq_len
            c0 = h * bs + b * seq_len
            pc_b[r0:r0 + seq_len, c0:c0 + seq_len] = perm[h]
    head_mask = (np.arange(HIDDEN)[None, :] // HEAD_DIM
                 == np.arange(num_heads)[:, None]).astype(np.float32)          # (H, D)
    hm_b = np.repeat(head_mask, bs, axis=0)                                    # (H*BS, D)
    # Segment-sum operator for the pooler's per-batch reductions.
    seg = np.kron(np.eye(batch, dtype=np.float32),
                  np.ones((1, seq_len), dtype=np.float32))                     # (B, BS)
    return perm, pc_b, hm_b, seg


# ------------------------------------ fused Pallas kernel --------------------------------------
def fused_kernel(x_ref, m_ref, pos_ref, encln_ref, pc_ref, hm_ref, seg_ref,
                 wqko_ref, wi_ref, wout_ref, vec8_ref, bi_ref,
                 pw1_ref, pvec_ref, o_ref):
    # ---- embedding + LayerNorm (dropout = eval-mode identity) ----
    encln = encln_ref[...]                                    # (2, D): [gamma; beta]
    h = _layernorm(x_ref[...] + pos_ref[...], encln[0:1], encln[1:2])          # (BS, D)

    pc = pc_ref[...]                                          # (BS, H*BS)
    hm = hm_ref[...]                                          # (H*BS, D)

    # ---- Flipformer layers (static unroll, LAYERS is small) ----
    for l in range(LAYERS):
        vec = vec8_ref[l]                                     # (8, D): bq,bk,bo,g1,b1,bout,g2,b2
        q = jnp.dot(h, wqko_ref[3 * l + 0], preferred_element_type=jnp.float32) + vec[0:1]
        k = jnp.dot(h, wqko_ref[3 * l + 1], preferred_element_type=jnp.float32) + vec[1:2]

        # per-head seq-flip of K as one batched block-diagonal matmul
        kstack = jnp.concatenate([k] * HEADS, axis=0) * hm    # (H*BS, D)
        fliper = jnp.dot(pc, kstack, preferred_element_type=jnp.float32)       # (BS, D)
        so = q * fliper                                       # FlipSelfAttention output

        # BertSelfOutput: dense + residual + LayerNorm
        attn = jnp.dot(so, wqko_ref[3 * l + 2], preferred_element_type=jnp.float32) + vec[2:3] + h
        attn = _layernorm(attn, vec[3:4], vec[4:5])

        # BertIntermediate: dense + GELU
        inter = _gelu(jnp.dot(attn, wi_ref[l], preferred_element_type=jnp.float32) + bi_ref[l])

        # BertOutput: dense + residual + LayerNorm
        out = jnp.dot(inter, wout_ref[l], preferred_element_type=jnp.float32) + vec[5:6] + attn
        h = _layernorm(out, vec[6:7], vec[7:8])

    # ---- AttentionPooling (per-batch reductions via segment matmul) ----
    pv = pvec_ref[...]                                        # (3, D): [pb1; pw2; pb2(bcast)]
    e = jnp.tanh(jnp.dot(h, pw1_ref[...], preferred_element_type=jnp.float32) + pv[0:1])
    logit = jnp.sum(e * pv[1:2], axis=-1, keepdims=True) + pv[2:3, 0:1]        # (BS, 1)
    gmax = jnp.max(logit, axis=0, keepdims=True)              # exp-overflow guard (1, 1)
    a = jnp.exp(logit - gmax) * m_ref[...]                    # (BS, 1) unnormalized alpha
    seg = seg_ref[...]                                        # (B, BS)
    num = jnp.dot(seg, h * a, preferred_element_type=jnp.float32)              # (B, D)
    den = (jnp.dot(seg, a, preferred_element_type=jnp.float32)
           + 1e-8 * jnp.exp(-gmax))                           # (B, 1)
    o_ref[...] = num * pl.reciprocal(den, approx=False)


# ------------------------------------ wrapper ---------------------------------------------------
def _full(shape):
    n = len(shape)
    return pl.BlockSpec(shape, lambda i, _n=n: (0,) * _n)


def flipformer_encoder(x, attn_mask, packed, pc_b, hm_b, seg):
    # extended_attention_mask is computed in the torch code but never used by
    # FlipSelfAttention, so it is omitted here (identical semantics).
    B, S, D = x.shape
    BS = B * S
    I, L, H = INTER, LAYERS, HEADS
    x_flat = x.reshape(BS, D)
    m_flat = attn_mask.reshape(BS, 1)
    pos_flat = jnp.tile(packed["pos"], (B, 1))                # (BS, D), one-time outside kernel
    out = pl.pallas_call(
        fused_kernel,
        out_shape=jax.ShapeDtypeStruct((B, D), jnp.float32),
        grid=(1,),
        in_specs=[
            _full((BS, D)),                                   # x (batch-flattened)
            _full((BS, 1)),                                   # pooler mask
            _full((BS, D)),                                   # position embeddings (tiled)
            _full((2, D)),                                    # encoder LN gamma/beta
            _full((BS, H * BS)),                              # stacked flip permutation
            _full((H * BS, D)),                               # stacked head mask
            _full((B, BS)),                                   # per-batch segment sums
            _full((L * 3, D, D)),                             # wq|wk|wo per layer
            _full((L, D, I)),                                 # wi
            _full((L, I, D)),                                 # wout
            _full((L, 8, D)),                                 # bq,bk,bo,g1,b1,bout,g2,b2
            _full((L, 1, I)),                                 # bi
            _full((D, D)),                                    # pooler w1
            _full((3, D)),                                    # pb1, pw2, pb2
        ],
        out_specs=_full((B, D)),
        compiler_params=pltpu.CompilerParams(dimension_semantics=("arbitrary",)),
    )(x_flat, m_flat, pos_flat, packed["encln"], pc_b, hm_b, seg,
      packed["wqko"], packed["wi"], packed["wout"], packed["vec8"], packed["bi"],
      packed["pw1"], packed["pvec"])
    return out


# ------------------------------------ parameters ------------------------------------------------
def init_params(key):
    keys = iter(jax.random.split(key, 64))
    nrm = lambda shape: (INIT_RANGE * jax.random.normal(next(keys), shape)).astype(jnp.float32)
    ones = lambda shape: jnp.ones(shape, jnp.float32)
    zeros = lambda shape: jnp.zeros(shape, jnp.float32)
    params = {
        "pos_emb": nrm((MAX_POS, HIDDEN)),
        "enc_g": ones((1, HIDDEN)), "enc_b": zeros((1, HIDDEN)),
        "layers": [],
        "pw1": nrm((HIDDEN, HIDDEN)), "pb1": zeros((1, HIDDEN)),
        "pw2": nrm((1, HIDDEN)), "pb2": zeros((1, 1)),
    }
    for _ in range(LAYERS):
        params["layers"].append({
            "wq": nrm((HIDDEN, HIDDEN)), "bq": zeros((1, HIDDEN)),
            "wk": nrm((HIDDEN, HIDDEN)), "bk": zeros((1, HIDDEN)),
            "wo": nrm((HIDDEN, HIDDEN)), "bo": zeros((1, HIDDEN)),
            "g1": ones((1, HIDDEN)), "b1": zeros((1, HIDDEN)),
            "wi": nrm((HIDDEN, INTER)), "bi": zeros((1, INTER)),
            "wout": nrm((INTER, HIDDEN)), "bout": zeros((1, HIDDEN)),
            "g2": ones((1, HIDDEN)), "b2": zeros((1, HIDDEN)),
        })
    return params


def pack_params(params):
    """One-time packing of the per-layer weights into few stacked arrays."""
    layers = params["layers"]
    wqko = jnp.concatenate(
        [jnp.stack([lw["wq"], lw["wk"], lw["wo"]], axis=0) for lw in layers], axis=0)  # (L*3,D,D)
    wi = jnp.stack([lw["wi"] for lw in layers], axis=0)                                # (L,D,I)
    wout = jnp.stack([lw["wout"] for lw in layers], axis=0)                            # (L,I,D)
    vec8 = jnp.stack(
        [jnp.concatenate([lw["bq"], lw["bk"], lw["bo"], lw["g1"],
                          lw["b1"], lw["bout"], lw["g2"], lw["b2"]], axis=0)
         for lw in layers], axis=0)                                                    # (L,8,D)
    bi = jnp.stack([lw["bi"] for lw in layers], axis=0)                                # (L,1,I)
    encln = jnp.concatenate([params["enc_g"], params["enc_b"]], axis=0)                # (2,D)
    pvec = jnp.concatenate([params["pb1"], params["pw2"],
                            jnp.broadcast_to(params["pb2"], (1, HIDDEN))], axis=0)     # (3,D)
    return {"pos": params["pos_emb"][:SEQ], "encln": encln, "wqko": wqko, "wi": wi,
            "wout": wout, "vec8": vec8, "bi": bi, "pw1": params["pw1"], "pvec": pvec}


# ------------------------------------ plain-JAX reference --------------------------------------
def reference_forward(x, attn_mask, params, perm):
    h = _layernorm(x + params["pos_emb"][:SEQ][None], params["enc_g"], params["enc_b"])
    col = jnp.arange(HIDDEN) // HEAD_DIM
    for lw in params["layers"]:
        q = h @ lw["wq"] + lw["bq"]
        k = h @ lw["wk"] + lw["bk"]
        fliper = jnp.zeros_like(q)
        for hd in range(HEADS):
            pk = jnp.einsum("st,btd->bsd", perm[hd], k)
            fliper = fliper + jnp.where((col == hd)[None, None, :], pk, 0.0)
        so = q * fliper
        attn = _layernorm(so @ lw["wo"] + lw["bo"] + h, lw["g1"], lw["b1"])
        inter = _gelu(attn @ lw["wi"] + lw["bi"])
        h = _layernorm(inter @ lw["wout"] + lw["bout"] + attn, lw["g2"], lw["b2"])
    e = jnp.tanh(h @ params["pw1"] + params["pb1"])
    logit = jnp.sum(e * params["pw2"], axis=-1, keepdims=True) + params["pb2"]
    alpha = jnp.exp(logit) * attn_mask[:, :, None]
    alpha = alpha / (jnp.sum(alpha, axis=1, keepdims=True) + 1e-8)
    return jnp.sum(h * alpha, axis=1)


# ------------------------------------ main ------------------------------------------------------
if __name__ == "__main__":
    key = jax.random.PRNGKey(0)
    kx, kp = jax.random.split(key)
    params = init_params(kp)
    packed = pack_params(params)

    x = jax.random.normal(kx, (BATCH, SEQ, HIDDEN), jnp.float32)
    lengths = jnp.array([SEQ, SEQ - 4])
    attn_mask = (jnp.arange(SEQ)[None, :] < lengths[:, None]).astype(jnp.float32)  # (B, S)

    perm_np, pc_b_np, hm_b_np, seg_np = build_flip_tables(SEQ, HEADS, BATCH)
    perm = jnp.asarray(perm_np)            # (H, S, S)      -- reference only
    pc_b = jnp.asarray(pc_b_np)            # (B*S, H*B*S)
    hm_b = jnp.asarray(hm_b_np)            # (H*B*S, D)
    seg = jnp.asarray(seg_np)              # (B, B*S)

    out = flipformer_encoder(x, attn_mask, packed, pc_b, hm_b, seg)
    out = jax.block_until_ready(out)

    ref = reference_forward(x, attn_mask, params, perm)
    np.testing.assert_allclose(np.asarray(out), np.asarray(ref), rtol=1e-4, atol=1e-4)
    print("KERNEL_OK")
</pallas_src>

<mosaic_0001>
module attributes {stable_mosaic.version = 11 : i64} {
  func.func @fused_kernel(%arg0: i32, %arg1: memref<32x32xf32, #tpu.memory_space<vmem>>, %arg2: memref<32x1xf32, #tpu.memory_space<vmem>>, %arg3: memref<32x32xf32, #tpu.memory_space<vmem>>, %arg4: memref<2x32xf32, #tpu.memory_space<vmem>>, %arg5: memref<32x128xf32, #tpu.memory_space<vmem>>, %arg6: memref<128x32xf32, #tpu.memory_space<vmem>>, %arg7: memref<2x32xf32, #tpu.memory_space<vmem>>, %arg8: memref<6x32x32xf32, #tpu.memory_space<vmem>>, %arg9: memref<2x32x64xf32, #tpu.memory_space<vmem>>, %arg10: memref<2x64x32xf32, #tpu.memory_space<vmem>>, %arg11: memref<2x8x32xf32, #tpu.memory_space<vmem>>, %arg12: memref<2x1x64xf32, #tpu.memory_space<vmem>>, %arg13: memref<32x32xf32, #tpu.memory_space<vmem>>, %arg14: memref<3x32xf32, #tpu.memory_space<vmem>>, %arg15: memref<2x32xf32, #tpu.memory_space<vmem>>) attributes {dimension_semantics = [#tpu.dimension_semantics<arbitrary>], iteration_bounds = array<i64: 1>, scalar_prefetch = 0 : i64, scratch_operands = 0 : i64, tpu.core_type = #tpu.core_type<tc>, window_params = [{pipeline_mode = #tpu.pipeline_mode<synchronous>, transform_indices = @transform_0, window_bounds = array<i64: 32, 32>}, {pipeline_mode = #tpu.pipeline_mode<synchronous>, transform_indices = @transform_1, window_bounds = array<i64: 32, 1>}, {pipeline_mode = #tpu.pipeline_mode<synchronous>, transform_indices = @transform_2, window_bounds = array<i64: 32, 32>}, {pipeline_mode = #tpu.pipeline_mode<synchronous>, transform_indices = @transform_3, window_bounds = array<i64: 2, 32>}, {pipeline_mode = #tpu.pipeline_mode<synchronous>, transform_indices = @transform_4, window_bounds = array<i64: 32, 128>}, {pipeline_mode = #tpu.pipeline_mode<synchronous>, transform_indices = @transform_5, window_bounds = array<i64: 128, 32>}, {pipeline_mode = #tpu.pipeline_mode<synchronous>, transform_indices = @transform_6, window_bounds = array<i64: 2, 32>}, {pipeline_mode = #tpu.pipeline_mode<synchronous>, transform_indices = @transform_7, window_bounds = array<i64: 6, 32, 32>}, {pipeline_mode = #tpu.pipeline_mode<synchronous>, transform_indices = @transform_8, window_bounds = array<i64: 2, 32, 64>}, {pipeline_mode = #tpu.pipeline_mode<synchronous>, transform_indices = @transform_9, window_bounds = array<i64: 2, 64, 32>}, {pipeline_mode = #tpu.pipeline_mode<synchronous>, transform_indices = @transform_10, window_bounds = array<i64: 2, 8, 32>}, {pipeline_mode = #tpu.pipeline_mode<synchronous>, transform_indices = @transform_11, window_bounds = array<i64: 2, 1, 64>}, {pipeline_mode = #tpu.pipeline_mode<synchronous>, transform_indices = @transform_12, window_bounds = array<i64: 32, 32>}, {pipeline_mode = #tpu.pipeline_mode<synchronous>, transform_indices = @transform_13, window_bounds = array<i64: 3, 32>}, {pipeline_mode = #tpu.pipeline_mode<synchronous>, transform_indices = @transform_14, window_bounds = array<i64: 2, 32>}]} {
    %c0 = arith.constant 0 : index
    %c0_0 = arith.constant 0 : index
    %0 = vector.load %arg4[%c0, %c0_0] : memref<2x32xf32, #tpu.memory_space<vmem>>, vector<2x32xf32>
    %c0_1 = arith.constant 0 : index
    %c0_2 = arith.constant 0 : index
    %1 = vector.load %arg1[%c0_1, %c0_2] : memref<32x32xf32, #tpu.memory_space<vmem>>, vector<32x32xf32>
    %c0_3 = arith.constant 0 : index
    %c0_4 = arith.constant 0 : index
    %2 = vector.load %arg3[%c0_3, %c0_4] : memref<32x32xf32, #tpu.memory_space<vmem>>, vector<32x32xf32>
    %3 = arith.addf %1, %2 : vector<32x32xf32>
    %4 = vector.extract_strided_slice %0 {offsets = [0, 0], sizes = [1, 32], strides = [1, 1]} : vector<2x32xf32> to vector<1x32xf32>
    %5 = vector.extract_strided_slice %0 {offsets = [1, 0], sizes = [1, 32], strides = [1, 1]} : vector<2x32xf32> to vector<1x32xf32>
    %cst = arith.constant dense<0.000000e+00> : vector<32xf32>
    %6 = vector.multi_reduction <add>, %3, %cst [1] : vector<32x32xf32> to vector<32xf32>
    %7 = vector.shape_cast %6 : vector<32xf32> to vector<32x1xf32>
    %cst_5 = arith.constant 3.200000e+01 : f32
    %8 = vector.broadcast %cst_5 : f32 to vector<32x1xf32>
    %9 = arith.divf %7, %8 : vector<32x1xf32>
    %10 = vector.broadcast %9 : vector<32x1xf32> to vector<32x32xf32>
    %11 = arith.subf %3, %10 : vector<32x32xf32>
    %12 = arith.mulf %11, %11 : vector<32x32xf32>
    %cst_6 = arith.constant dense<0.000000e+00> : vector<32xf32>
    %13 = vector.multi_reduction <add>, %12, %cst_6 [1] : vector<32x32xf32> to vector<32xf32>
    %14 = vector.shape_cast %13 : vector<32xf32> to vector<32x1xf32>
    %cst_7 = arith.constant 3.200000e+01 : f32
    %15 = vector.broadcast %cst_7 : f32 to vector<32x1xf32>
    %16 = arith.divf %14, %15 : vector<32x1xf32>
    %17 = vector.broadcast %9 : vector<32x1xf32> to vector<32x32xf32>
    %18 = arith.subf %3, %17 : vector<32x32xf32>
    %cst_8 = arith.constant 9.99999996E-13 : f32
    %19 = vector.broadcast %cst_8 : f32 to vector<32x1xf32>
    %20 = arith.addf %16, %19 : vector<32x1xf32>
    %21 = math.rsqrt %20 : vector<32x1xf32>
    %22 = vector.broadcast %21 : vector<32x1xf32> to vector<32x32xf32>
    %23 = arith.mulf %18, %22 : vector<32x32xf32>
    %24 = vector.broadcast %4 : vector<1x32xf32> to vector<32x32xf32>
    %25 = arith.mulf %23, %24 : vector<32x32xf32>
    %26 = vector.broadcast %5 : vector<1x32xf32> to vector<32x32xf32>
    %27 = arith.addf %25, %26 : vector<32x32xf32>
    %c0_9 = arith.constant 0 : index
    %c0_10 = arith.constant 0 : index
    %28 = vector.load %arg5[%c0_9, %c0_10] : memref<32x128xf32, #tpu.memory_space<vmem>>, vector<32x128xf32>
    %c0_11 = arith.constant 0 : index
    %c0_12 = arith.constant 0 : index
    %29 = vector.load %arg6[%c0_11, %c0_12] : memref<128x32xf32, #tpu.memory_space<vmem>>, vector<128x32xf32>
    %c0_13 = arith.constant 0 : index
    %c0_14 = arith.constant 0 : index
    %c0_15 = arith.constant 0 : index
    %30 = vector.load %arg11[%c0_13, %c0_14, %c0_15] : memref<2x8x32xf32, #tpu.memory_space<vmem>>, vector<1x8x32xf32>
    %31 = vector.shape_cast %30 : vector<1x8x32xf32> to vector<8x32xf32>
    %c0_16 = arith.constant 0 : index
    %c0_17 = arith.constant 0 : index
    %c0_18 = arith.constant 0 : index
    %32 = vector.load %arg8[%c0_16, %c0_17, %c0_18] : memref<6x32x32xf32, #tpu.memory_space<vmem>>, vector<1x32x32xf32>
    %33 = vector.shape_cast %32 : vector<1x32x32xf32> to vector<32x32xf32>
    %cst_19 = arith.constant dense<0.000000e+00> : vector<32x32xf32>
    %34 = tpu.matmul %27, %33, %cst_19 {dimension_numbers = #tpu.dot_dimension_numbers<[1], [0], [0], [1], [0, 0, 1, 1], [], []>} : vector<32x32xf32>, vector<32x32xf32>, vector<32x32xf32> -> vector<32x32xf32>
    %35 = vector.extract_strided_slice %31 {offsets = [0, 0], sizes = [1, 32], strides = [1, 1]} : vector<8x32xf32> to vector<1x32xf32>
    %36 = vector.broadcast %35 : vector<1x32xf32> to vector<32x32xf32>
    %37 = arith.addf %34, %36 : vector<32x32xf32>
    %c1 = arith.constant 1 : index
    %c0_20 = arith.constant 0 : index
    %c0_21 = arith.constant 0 : index
    %38 = vector.load %arg8[%c1, %c0_20, %c0_21] : memref<6x32x32xf32, #tpu.memory_space<vmem>>, vector<1x32x32xf32>
    %39 = vector.shape_cast %38 : vector<1x32x32xf32> to vector<32x32xf32>
    %cst_22 = arith.constant dense<0.000000e+00> : vector<32x32xf32>
    %40 = tpu.matmul %27, %39, %cst_22 {dimension_numbers = #tpu.dot_dimension_numbers<[1], [0], [0], [1], [0, 0, 1, 1], [], []>} : vector<32x32xf32>, vector<32x32xf32>, vector<32x32xf32> -> vector<32x32xf32>
    %41 = vector.extract_strided_slice %31 {offsets = [1, 0], sizes = [1, 32], strides = [1, 1]} : vector<8x32xf32> to vector<1x32xf32>
    %42 = vector.broadcast %41 : vector<1x32xf32> to vector<32x32xf32>
    %43 = arith.addf %40, %42 : vector<32x32xf32>
    %44 = tpu.concatenate %43, %43, %43, %43 in 0 : vector<32x32xf32>, vector<32x32xf32>, vector<32x32xf32>, vector<32x32xf32> -> vector<128x32xf32>
    %45 = arith.mulf %44, %29 : vector<128x32xf32>
    %cst_23 = arith.constant dense<0.000000e+00> : vector<32x32xf32>
    %46 = tpu.matmul %28, %45, %cst_23 {dimension_numbers = #tpu.dot_dimension_numbers<[1], [0], [0], [1], [0, 0, 1, 1], [], []>} : vector<32x128xf32>, vector<128x32xf32>, vector<32x32xf32> -> vector<32x32xf32>
    %47 = arith.mulf %37, %46 : vector<32x32xf32>
    %c2 = arith.constant 2 : index
    %c0_24 = arith.constant 0 : index
    %c0_25 = arith.constant 0 : index
    %48 = vector.load %arg8[%c2, %c0_24, %c0_25] : memref<6x32x32xf32, #tpu.memory_space<vmem>>, vector<1x32x32xf32>
    %49 = vector.shape_cast %48 : vector<1x32x32xf32> to vector<32x32xf32>
    %cst_26 = arith.constant dense<0.000000e+00> : vector<32x32xf32>
    %50 = tpu.matmul %47, %49, %cst_26 {dimension_numbers = #tpu.dot_dimension_numbers<[1], [0], [0], [1], [0, 0, 1, 1], [], []>} : vector<32x32xf32>, vector<32x32xf32>, vector<32x32xf32> -> vector<32x32xf32>
    %51 = vector.extract_strided_slice %31 {offsets = [2, 0], sizes = [1, 32], strides = [1, 1]} : vector<8x32xf32> to vector<1x32xf32>
    %52 = vector.broadcast %51 : vector<1x32xf32> to vector<32x32xf32>
    %53 = arith.addf %50, %52 : vector<32x32xf32>
    %54 = arith.addf %53, %27 : vector<32x32xf32>
    %55 = vector.extract_strided_slice %31 {offsets = [3, 0], sizes = [1, 32], strides = [1, 1]} : vector<8x32xf32> to vector<1x32xf32>
    %56 = vector.extract_strided_slice %31 {offsets = [4, 0], sizes = [1, 32], strides = [1, 1]} : vector<8x32xf32> to vector<1x32xf32>
    %cst_27 = arith.constant dense<0.000000e+00> : vector<32xf32>
    %57 = vector.multi_reduction <add>, %54, %cst_27 [1] : vector<32x32xf32> to vector<32xf32>
    %58 = vector.shape_cast %57 : vector<32xf32> to vector<32x1xf32>
    %cst_28 = arith.constant 3.200000e+01 : f32
    %59 = vector.broadcast %cst_28 : f32 to vector<32x1xf32>
    %60 = arith.divf %58, %59 : vector<32x1xf32>
    %61 = vector.broadcast %60 : vector<32x1xf32> to vector<32x32xf32>
    %62 = arith.subf %54, %61 : vector<32x32xf32>
    %63 = arith.mulf %62, %62 : vector<32x32xf32>
    %cst_29 = arith.constant dense<0.000000e+00> : vector<32xf32>
    %64 = vector.multi_reduction <add>, %63, %cst_29 [1] : vector<32x32xf32> to vector<32xf32>
    %65 = vector.shape_cast %64 : vector<32xf32> to vector<32x1xf32>
    %cst_30 = arith.constant 3.200000e+01 : f32
    %66 = vector.broadcast %cst_30 : f32 to vector<32x1xf32>
    %67 = arith.divf %65, %66 : vector<32x1xf32>
    %68 = vector.broadcast %60 : vector<32x1xf32> to vector<32x32xf32>
    %69 = arith.subf %54, %68 : vector<32x32xf32>
    %cst_31 = arith.constant 9.99999996E-13 : f32
    %70 = vector.broadcast %cst_31 : f32 to vector<32x1xf32>
    %71 = arith.addf %67, %70 : vector<32x1xf32>
    %72 = math.rsqrt %71 : vector<32x1xf32>
    %73 = vector.broadcast %72 : vector<32x1xf32> to vector<32x32xf32>
    %74 = arith.mulf %69, %73 : vector<32x32xf32>
    %75 = vector.broadcast %55 : vector<1x32xf32> to vector<32x32xf32>
    %76 = arith.mulf %74, %75 : vector<32x32xf32>
    %77 = vector.broadcast %56 : vector<1x32xf32> to vector<32x32xf32>
    %78 = arith.addf %76, %77 : vector<32x32xf32>
    %c0_32 = arith.constant 0 : index
    %c0_33 = arith.constant 0 : index
    %c0_34 = arith.constant 0 : index
    %79 = vector.load %arg9[%c0_32, %c0_33, %c0_34] : memref<2x32x64xf32, #tpu.memory_space<vmem>>, vector<1x32x64xf32>
    %80 = vector.shape_cast %79 : vector<1x32x64xf32> to vector<32x64xf32>
    %cst_35 = arith.constant dense<0.000000e+00> : vector<32x64xf32>
    %81 = tpu.matmul %78, %80, %cst_35 {dimension_numbers = #tpu.dot_dimension_numbers<[1], [0], [0], [1], [0, 0, 1, 1], [], []>} : vector<32x32xf32>, vector<32x64xf32>, vector<32x64xf32> -> vector<32x64xf32>
    %c0_36 = arith.constant 0 : index
    %c0_37 = arith.constant 0 : index
    %c0_38 = arith.constant 0 : index
    %82 = vector.load %arg12[%c0_36, %c0_37, %c0_38] : memref<2x1x64xf32, #tpu.memory_space<vmem>>, vector<1x1x64xf32>
    %83 = vector.shape_cast %82 : vector<1x1x64xf32> to vector<1x64xf32>
    %84 = vector.broadcast %83 : vector<1x64xf32> to vector<32x64xf32>
    %85 = arith.addf %81, %84 : vector<32x64xf32>
    %cst_39 = arith.constant 5.000000e-01 : f32
    %86 = vector.broadcast %cst_39 : f32 to vector<32x64xf32>
    %87 = arith.mulf %86, %85 : vector<32x64xf32>
    %cst_40 = arith.constant 4.471500e-02 : f32
    %88 = vector.broadcast %cst_40 : f32 to vector<32x64xf32>
    %89 = arith.mulf %88, %85 : vector<32x64xf32>
    %90 = arith.mulf %89, %85 : vector<32x64xf32>
    %91 = arith.mulf %90, %85 : vector<32x64xf32>
    %92 = arith.addf %85, %91 : vector<32x64xf32>
    %cst_41 = arith.constant 0.797884583 : f32
    %93 = vector.broadcast %cst_41 : f32 to vector<32x64xf32>
    %94 = arith.mulf %93, %92 : vector<32x64xf32>
    %95 = math.tanh %94 : vector<32x64xf32>
    %cst_42 = arith.constant 1.000000e+00 : f32
    %96 = vector.broadcast %cst_42 : f32 to vector<32x64xf32>
    %97 = arith.addf %96, %95 : vector<32x64xf32>
    %98 = arith.mulf %87, %97 : vector<32x64xf32>
    %c0_43 = arith.constant 0 : index
    %c0_44 = arith.constant 0 : index
    %c0_45 = arith.constant 0 : index
    %99 = vector.load %arg10[%c0_43, %c0_44, %c0_45] : memref<2x64x32xf32, #tpu.memory_space<vmem>>, vector<1x64x32xf32>
    %100 = vector.shape_cast %99 : vector<1x64x32xf32> to vector<64x32xf32>
    %cst_46 = arith.constant dense<0.000000e+00> : vector<32x32xf32>
    %101 = tpu.matmul %98, %100, %cst_46 {dimension_numbers = #tpu.dot_dimension_numbers<[1], [0], [0], [1], [0, 0, 1, 1], [], []>} : vector<32x64xf32>, vector<64x32xf32>, vector<32x32xf32> -> vector<32x32xf32>
    %102 = vector.extract_strided_slice %31 {offsets = [5, 0], sizes = [1, 32], strides = [1, 1]} : vector<8x32xf32> to vector<1x32xf32>
    %103 = vector.broadcast %102 : vector<1x32xf32> to vector<32x32xf32>
    %104 = arith.addf %101, %103 : vector<32x32xf32>
    %105 = arith.addf %104, %78 : vector<32x32xf32>
    %106 = vector.extract_strided_slice %31 {offsets = [6, 0], sizes = [1, 32], strides = [1, 1]} : vector<8x32xf32> to vector<1x32xf32>
    %107 = vector.extract_strided_slice %31 {offsets = [7, 0], sizes = [1, 32], strides = [1, 1]} : vector<8x32xf32> to vector<1x32xf32>
    %cst_47 = arith.constant dense<0.000000e+00> : vector<32xf32>
    %108 = vector.multi_reduction <add>, %105, %cst_47 [1] : vector<32x32xf32> to vector<32xf32>
    %109 = vector.shape_cast %108 : vector<32xf32> to vector<32x1xf32>
    %cst_48 = arith.constant 3.200000e+01 : f32
    %110 = vector.broadcast %cst_48 : f32 to vector<32x1xf32>
    %111 = arith.divf %109, %110 : vector<32x1xf32>
    %112 = vector.broadcast %111 : vector<32x1xf32> to vector<32x32xf32>
    %113 = arith.subf %105, %112 : vector<32x32xf32>
    %114 = arith.mulf %113, %113 : vector<32x32xf32>
    %cst_49 = arith.constant dense<0.000000e+00> : vector<32xf32>
    %115 = vector.multi_reduction <add>, %114, %cst_49 [1] : vector<32x32xf32> to vector<32xf32>
    %116 = vector.shape_cast %115 : vector<32xf32> to vector<32x1xf32>
    %cst_50 = arith.constant 3.200000e+01 : f32
    %117 = vector.broadcast %cst_50 : f32 to vector<32x1xf32>
    %118 = arith.divf %116, %117 : vector<32x1xf32>
    %119 = vector.broadcast %111 : vector<32x1xf32> to vector<32x32xf32>
    %120 = arith.subf %105, %119 : vector<32x32xf32>
    %cst_51 = arith.constant 9.99999996E-13 : f32
    %121 = vector.broadcast %cst_51 : f32 to vector<32x1xf32>
    %122 = arith.addf %118, %121 : vector<32x1xf32>
    %123 = math.rsqrt %122 : vector<32x1xf32>
    %124 = vector.broadcast %123 : vector<32x1xf32> to vector<32x32xf32>
    %125 = arith.mulf %120, %124 : vector<32x32xf32>
    %126 = vector.broadcast %106 : vector<1x32xf32> to vector<32x32xf32>
    %127 = arith.mulf %125, %126 : vector<32x32xf32>
    %128 = vector.broadcast %107 : vector<1x32xf32> to vector<32x32xf32>
    %129 = arith.addf %127, %128 : vector<32x32xf32>
    %c1_52 = arith.constant 1 : index
    %c0_53 = arith.constant 0 : index
    %c0_54 = arith.constant 0 : index
    %130 = vector.load %arg11[%c1_52, %c0_53, %c0_54] : memref<2x8x32xf32, #tpu.memory_space<vmem>>, vector<1x8x32xf32>
    %131 = vector.shape_cast %130 : vector<1x8x32xf32> to vector<8x32xf32>
    %c3 = arith.constant 3 : index
    %c0_55 = arith.constant 0 : index
    %c0_56 = arith.constant 0 : index
    %132 = vector.load %arg8[%c3, %c0_55, %c0_56] : memref<6x32x32xf32, #tpu.memory_space<vmem>>, vector<1x32x32xf32>
    %133 = vector.shape_cast %132 : vector<1x32x32xf32> to vector<32x32xf32>
    %cst_57 = arith.constant dense<0.000000e+00> : vector<32x32xf32>
    %134 = tpu.matmul %129, %133, %cst_57 {dimension_numbers = #tpu.dot_dimension_numbers<[1], [0], [0], [1], [0, 0, 1, 1], [], []>} : vector<32x32xf32>, vector<32x32xf32>, vector<32x32xf32> -> vector<32x32xf32>
    %135 = vector.extract_strided_slice %131 {offsets = [0, 0], sizes = [1, 32], strides = [1, 1]} : vector<8x32xf32> to vector<1x32xf32>
    %136 = vector.broadcast %135 : vector<1x32xf32> to vector<32x32xf32>
    %137 = arith.addf %134, %136 : vector<32x32xf32>
    %c4 = arith.constant 4 : index
    %c0_58 = arith.constant 0 : index
    %c0_59 = arith.constant 0 : index
    %138 = vector.load %arg8[%c4, %c0_58, %c0_59] : memref<6x32x32xf32, #tpu.memory_space<vmem>>, vector<1x32x32xf32>
    %139 = vector.shape_cast %138 : vector<1x32x32xf32> to vector<32x32xf32>
    %cst_60 = arith.constant dense<0.000000e+00> : vector<32x32xf32>
    %140 = tpu.matmul %129, %139, %cst_60 {dimension_numbers = #tpu.dot_dimension_numbers<[1], [0], [0], [1], [0, 0, 1, 1], [], []>} : vector<32x32xf32>, vector<32x32xf32>, vector<32x32xf32> -> vector<32x32xf32>
    %141 = vector.extract_strided_slice %131 {offsets = [1, 0], sizes = [1, 32], strides = [1, 1]} : vector<8x32xf32> to vector<1x32xf32>
    %142 = vector.broadcast %141 : vector<1x32xf32> to vector<32x32xf32>
    %143 = arith.addf %140, %142 : vector<32x32xf32>
    %144 = tpu.concatenate %143, %143, %143, %143 in 0 : vector<32x32xf32>, vector<32x32xf32>, vector<32x32xf32>, vector<32x32xf32> -> vector<128x32xf32>
    %145 = arith.mulf %144, %29 : vector<128x32xf32>
    %cst_61 = arith.constant dense<0.000000e+00> : vector<32x32xf32>
    %146 = tpu.matmul %28, %145, %cst_61 {dimension_numbers = #tpu.dot_dimension_numbers<[1], [0], [0], [1], [0, 0, 1, 1], [], []>} : vector<32x128xf32>, vector<128x32xf32>, vector<32x32xf32> -> vector<32x32xf32>
    %147 = arith.mulf %137, %146 : vector<32x32xf32>
    %c5 = arith.constant 5 : index
    %c0_62 = arith.constant 0 : index
    %c0_63 = arith.constant 0 : index
    %148 = vector.load %arg8[%c5, %c0_62, %c0_63] : memref<6x32x32xf32, #tpu.memory_space<vmem>>, vector<1x32x32xf32>
    %149 = vector.shape_cast %148 : vector<1x32x32xf32> to vector<32x32xf32>
    %cst_64 = arith.constant dense<0.000000e+00> : vector<32x32xf32>
    %150 = tpu.matmul %147, %149, %cst_64 {dimension_numbers = #tpu.dot_dimension_numbers<[1], [0], [0], [1], [0, 0, 1, 1], [], []>} : vector<32x32xf32>, vector<32x32xf32>, vector<32x32xf32> -> vector<32x32xf32>
    %151 = vector.extract_strided_slice %131 {offsets = [2, 0], sizes = [1, 32], strides = [1, 1]} : vector<8x32xf32> to vector<1x32xf32>
    %152 = vector.broadcast %151 : vector<1x32xf32> to vector<32x32xf32>
    %153 = arith.addf %150, %152 : vector<32x32xf32>
    %154 = arith.addf %153, %129 : vector<32x32xf32>
    %155 = vector.extract_strided_slice %131 {offsets = [3, 0], sizes = [1, 32], strides = [1, 1]} : vector<8x32xf32> to vector<1x32xf32>
    %156 = vector.extract_strided_slice %131 {offsets = [4, 0], sizes = [1, 32], strides = [1, 1]} : vector<8x32xf32> to vector<1x32xf32>
    %cst_65 = arith.constant dense<0.000000e+00> : vector<32xf32>
    %157 = vector.multi_reduction <add>, %154, %cst_65 [1] : vector<32x32xf32> to vector<32xf32>
    %158 = vector.shape_cast %157 : vector<32xf32> to vector<32x1xf32>
    %cst_66 = arith.constant 3.200000e+01 : f32
    %159 = vector.broadcast %cst_66 : f32 to vector<32x1xf32>
    %160 = arith.divf %158, %159 : vector<32x1xf32>
    %161 = vector.broadcast %160 : vector<32x1xf32> to vector<32x32xf32>
    %162 = arith.subf %154, %161 : vector<32x32xf32>
    %163 = arith.mulf %162, %162 : vector<32x32xf32>
    %cst_67 = arith.constant dense<0.000000e+00> : vector<32xf32>
    %164 = vector.multi_reduction <add>, %163, %cst_67 [1] : vector<32x32xf32> to vector<32xf32>
    %165 = vector.shape_cast %164 : vector<32xf32> to vector<32x1xf32>
    %cst_68 = arith.constant 3.200000e+01 : f32
    %166 = vector.broadcast %cst_68 : f32 to vector<32x1xf32>
    %167 = arith.divf %165, %166 : vector<32x1xf32>
    %168 = vector.broadcast %160 : vector<32x1xf32> to vector<32x32xf32>
    %169 = arith.subf %154, %168 : vector<32x32xf32>
    %cst_69 = arith.constant 9.99999996E-13 : f32
    %170 = vector.broadcast %cst_69 : f32 to vector<32x1xf32>
    %171 = arith.addf %167, %170 : vector<32x1xf32>
    %172 = math.rsqrt %171 : vector<32x1xf32>
    %173 = vector.broadcast %172 : vector<32x1xf32> to vector<32x32xf32>
    %174 = arith.mulf %169, %173 : vector<32x32xf32>
    %175 = vector.broadcast %155 : vector<1x32xf32> to vector<32x32xf32>
    %176 = arith.mulf %174, %175 : vector<32x32xf32>
    %177 = vector.broadcast %156 : vector<1x32xf32> to vector<32x32xf32>
    %178 = arith.addf %176, %177 : vector<32x32xf32>
    %c1_70 = arith.constant 1 : index
    %c0_71 = arith.constant 0 : index
    %c0_72 = arith.constant 0 : index
    %179 = vector.load %arg9[%c1_70, %c0_71, %c0_72] : memref<2x32x64xf32, #tpu.memory_space<vmem>>, vector<1x32x64xf32>
    %180 = vector.shape_cast %179 : vector<1x32x64xf32> to vector<32x64xf32>
    %cst_73 = arith.constant dense<0.000000e+00> : vector<32x64xf32>
    %181 = tpu.matmul %178, %180, %cst_73 {dimension_numbers = #tpu.dot_dimension_numbers<[1], [0], [0], [1], [0, 0, 1, 1], [], []>} : vector<32x32xf32>, vector<32x64xf32>, vector<32x64xf32> -> vector<32x64xf32>
    %c1_74 = arith.constant 1 : index
    %c0_75 = arith.constant 0 : index
    %c0_76 = arith.constant 0 : index
    %182 = vector.load %arg12[%c1_74, %c0_75, %c0_76] : memref<2x1x64xf32, #tpu.memory_space<vmem>>, vector<1x1x64xf32>
    %183 = vector.shape_cast %182 : vector<1x1x64xf32> to vector<1x64xf32>
    %184 = vector.broadcast %183 : vector<1x64xf32> to vector<32x64xf32>
    %185 = arith.addf %181, %184 : vector<32x64xf32>
    %cst_77 = arith.constant 5.000000e-01 : f32
    %186 = vector.broadcast %cst_77 : f32 to vector<32x64xf32>
    %187 = arith.mulf %186, %185 : vector<32x64xf32>
    %cst_78 = arith.constant 4.471500e-02 : f32
    %188 = vector.broadcast %cst_78 : f32 to vector<32x64xf32>
    %189 = arith.mulf %188, %185 : vector<32x64xf32>
    %190 = arith.mulf %189, %185 : vector<32x64xf32>
    %191 = arith.mulf %190, %185 : vector<32x64xf32>
    %192 = arith.addf %185, %191 : vector<32x64xf32>
    %cst_79 = arith.constant 0.797884583 : f32
    %193 = vector.broadcast %cst_79 : f32 to vector<32x64xf32>
    %194 = arith.mulf %193, %192 : vector<32x64xf32>
    %195 = math.tanh %194 : vector<32x64xf32>
    %cst_80 = arith.constant 1.000000e+00 : f32
    %196 = vector.broadcast %cst_80 : f32 to vector<32x64xf32>
    %197 = arith.addf %196, %195 : vector<32x64xf32>
    %198 = arith.mulf %187, %197 : vector<32x64xf32>
    %c1_81 = arith.constant 1 : index
    %c0_82 = arith.constant 0 : index
    %c0_83 = arith.constant 0 : index
    %199 = vector.load %arg10[%c1_81, %c0_82, %c0_83] : memref<2x64x32xf32, #tpu.memory_space<vmem>>, vector<1x64x32xf32>
    %200 = vector.shape_cast %199 : vector<1x64x32xf32> to vector<64x32xf32>
    %cst_84 = arith.constant dense<0.000000e+00> : vector<32x32xf32>
    %201 = tpu.matmul %198, %200, %cst_84 {dimension_numbers = #tpu.dot_dimension_numbers<[1], [0], [0], [1], [0, 0, 1, 1], [], []>} : vector<32x64xf32>, vector<64x32xf32>, vector<32x32xf32> -> vector<32x32xf32>
    %202 = vector.extract_strided_slice %131 {offsets = [5, 0], sizes = [1, 32], strides = [1, 1]} : vector<8x32xf32> to vector<1x32xf32>
    %203 = vector.broadcast %202 : vector<1x32xf32> to vector<32x32xf32>
    %204 = arith.addf %201, %203 : vector<32x32xf32>
    %205 = arith.addf %204, %178 : vector<32x32xf32>
    %206 = vector.extract_strided_slice %131 {offsets = [6, 0], sizes = [1, 32], strides = [1, 1]} : vector<8x32xf32> to vector<1x32xf32>
    %207 = vector.extract_strided_slice %131 {offsets = [7, 0], sizes = [1, 32], strides = [1, 1]} : vector<8x32xf32> to vector<1x32xf32>
    %cst_85 = arith.constant dense<0.000000e+00> : vector<32xf32>
    %208 = vector.multi_reduction <add>, %205, %cst_85 [1] : vector<32x32xf32> to vector<32xf32>
    %209 = vector.shape_cast %208 : vector<32xf32> to vector<32x1xf32>
    %cst_86 = arith.constant 3.200000e+01 : f32
    %210 = vector.broadcast %cst_86 : f32 to vector<32x1xf32>
    %211 = arith.divf %209, %210 : vector<32x1xf32>
    %212 = vector.broadcast %211 : vector<32x1xf32> to vector<32x32xf32>
    %213 = arith.subf %205, %212 : vector<32x32xf32>
    %214 = arith.mulf %213, %213 : vector<32x32xf32>
    %cst_87 = arith.constant dense<0.000000e+00> : vector<32xf32>
    %215 = vector.multi_reduction <add>, %214, %cst_87 [1] : vector<32x32xf32> to vector<32xf32>
    %216 = vector.shape_cast %215 : vector<32xf32> to vector<32x1xf32>
    %cst_88 = arith.constant 3.200000e+01 : f32
    %217 = vector.broadcast %cst_88 : f32 to vector<32x1xf32>
    %218 = arith.divf %216, %217 : vector<32x1xf32>
    %219 = vector.broadcast %211 : vector<32x1xf32> to vector<32x32xf32>
    %220 = arith.subf %205, %219 : vector<32x32xf32>
    %cst_89 = arith.constant 9.99999996E-13 : f32
    %221 = vector.broadcast %cst_89 : f32 to vector<32x1xf32>
    %222 = arith.addf %218, %221 : vector<32x1xf32>
    %223 = math.rsqrt %222 : vector<32x1xf32>
    %224 = vector.broadcast %223 : vector<32x1xf32> to vector<32x32xf32>
    %225 = arith.mulf %220, %224 : vector<32x32xf32>
    %226 = vector.broadcast %206 : vector<1x32xf32> to vector<32x32xf32>
    %227 = arith.mulf %225, %226 : vector<32x32xf32>
    %228 = vector.broadcast %207 : vector<1x32xf32> to vector<32x32xf32>
    %229 = arith.addf %227, %228 : vector<32x32xf32>
    %c0_90 = arith.constant 0 : index
    %c0_91 = arith.constant 0 : index
    %230 = vector.load %arg14[%c0_90, %c0_91] : memref<3x32xf32, #tpu.memory_space<vmem>>, vector<3x32xf32>
    %c0_92 = arith.constant 0 : index
    %c0_93 = arith.constant 0 : index
    %231 = vector.load %arg13[%c0_92, %c0_93] : memref<32x32xf32, #tpu.memory_space<vmem>>, vector<32x32xf32>
    %cst_94 = arith.constant dense<0.000000e+00> : vector<32x32xf32>
    %232 = tpu.matmul %229, %231, %cst_94 {dimension_numbers = #tpu.dot_dimension_numbers<[1], [0], [0], [1], [0, 0, 1, 1], [], []>} : vector<32x32xf32>, vector<32x32xf32>, vector<32x32xf32> -> vector<32x32xf32>
    %233 = vector.extract_strided_slice %230 {offsets = [0, 0], sizes = [1, 32], strides = [1, 1]} : vector<3x32xf32> to vector<1x32xf32>
    %234 = vector.broadcast %233 : vector<1x32xf32> to vector<32x32xf32>
    %235 = arith.addf %232, %234 : vector<32x32xf32>
    %236 = math.tanh %235 : vector<32x32xf32>
    %237 = vector.extract_strided_slice %230 {offsets = [1, 0], sizes = [1, 32], strides = [1, 1]} : vector<3x32xf32> to vector<1x32xf32>
    %238 = vector.broadcast %237 : vector<1x32xf32> to vector<32x32xf32>
    %239 = arith.mulf %236, %238 : vector<32x32xf32>
    %cst_95 = arith.constant dense<0.000000e+00> : vector<32xf32>
    %240 = vector.multi_reduction <add>, %239, %cst_95 [1] : vector<32x32xf32> to vector<32xf32>
    %241 = vector.shape_cast %240 : vector<32xf32> to vector<32x1xf32>
    %242 = vector.extract_strided_slice %230 {offsets = [2, 0], sizes = [1, 1], strides = [1, 1]} : vector<3x32xf32> to vector<1x1xf32>
    %243 = vector.broadcast %242 : vector<1x1xf32> to vector<32x1xf32>
    %244 = arith.addf %241, %243 : vector<32x1xf32>
    %cst_96 = arith.constant dense<0xFF800000> : vector<1xf32>
    %245 = vector.multi_reduction <maximumf>, %244, %cst_96 [0] : vector<32x1xf32> to vector<1xf32>
    %246 = vector.shape_cast %245 : vector<1xf32> to vector<1x1xf32>
    %247 = vector.broadcast %246 : vector<1x1xf32> to vector<32x1xf32>
    %248 = arith.subf %244, %247 : vector<32x1xf32>
    %249 = math.exp %248 : vector<32x1xf32>
    %c0_97 = arith.constant 0 : index
    %c0_98 = arith.constant 0 : index
    %250 = vector.load %arg2[%c0_97, %c0_98] : memref<32x1xf32, #tpu.memory_space<vmem>>, vector<32x1xf32>
    %251 = arith.mulf %249, %250 : vector<32x1xf32>
    %c0_99 = arith.constant 0 : index
    %c0_100 = arith.constant 0 : index
    %252 = vector.load %arg7[%c0_99, %c0_100] : memref<2x32xf32, #tpu.memory_space<vmem>>, vector<2x32xf32>
    %253 = vector.broadcast %251 : vector<32x1xf32> to vector<32x32xf32>
    %254 = arith.mulf %229, %253 : vector<32x32xf32>
    %cst_101 = arith.constant dense<0.000000e+00> : vector<2x32xf32>
    %255 = tpu.matmul %252, %254, %cst_101 {dimension_numbers = #tpu.dot_dimension_numbers<[1], [0], [0], [1], [0, 0, 1, 1], [], []>} : vector<2x32xf32>, vector<32x32xf32>, vector<2x32xf32> -> vector<2x32xf32>
    %cst_102 = arith.constant dense<0.000000e+00> : vector<2x1xf32>
    %256 = tpu.matmul %252, %251, %cst_102 {dimension_numbers = #tpu.dot_dimension_numbers<[1], [0], [0], [1], [0, 0, 1, 1], [], []>} : vector<2x32xf32>, vector<32x1xf32>, vector<2x1xf32> -> vector<2x1xf32>
    %cst_103 = arith.constant 0.000000e+00 : f32
    %257 = vector.broadcast %cst_103 : f32 to vector<1x1xf32>
    %258 = arith.subf %257, %246 : vector<1x1xf32>
    %259 = math.exp %258 : vector<1x1xf32>
    %cst_104 = arith.constant 9.99999993E-9 : f32
    %260 = vector.broadcast %cst_104 : f32 to vector<1x1xf32>
    %261 = arith.mulf %260, %259 : vector<1x1xf32>
    %262 = vector.broadcast %261 : vector<1x1xf32> to vector<2x1xf32>
    %263 = arith.addf %256, %262 : vector<2x1xf32>
    %264 = tpu.reciprocal %263 : vector<2x1xf32> -> vector<2x1xf32>
    %265 = vector.broadcast %264 : vector<2x1xf32> to vector<2x32xf32>
    %266 = arith.mulf %255, %265 : vector<2x32xf32>
    %c0_105 = arith.constant 0 : index
    %c0_106 = arith.constant 0 : index
    %267 = vector.load %arg15[%c0_105, %c0_106] : memref<2x32xf32, #tpu.memory_space<vmem>>, vector<2x32xf32>
    tpu.vector_store %arg15[%c0_105, %c0_106], %266 {strides = array<i32>} : memref<2x32xf32, #tpu.memory_space<vmem>>, vector<2x32xf32>,
    return
  }
  func.func @transform_0(%arg0: i32) -> (i32, i32) {
    %c0_i32 = arith.constant 0 : i32
    %c0_i32_0 = arith.constant 0 : i32
    %c0_i32_1 = arith.constant 0 : i32
    return %c0_i32, %c0_i32_0 : i32, i32
  }
  func.func @transform_1(%arg0: i32) -> (i32, i32) {
    %c0_i32 = arith.constant 0 : i32
    %c0_i32_0 = arith.constant 0 : i32
    %c0_i32_1 = arith.constant 0 : i32
    return %c0_i32, %c0_i32_0 : i32, i32
  }
  func.func @transform_2(%arg0: i32) -> (i32, i32) {
    %c0_i32 = arith.constant 0 : i32
    %c0_i32_0 = arith.constant 0 : i32
    %c0_i32_1 = arith.constant 0 : i32
    return %c0_i32, %c0_i32_0 : i32, i32
  }
  func.func @transform_3(%arg0: i32) -> (i32, i32) {
    %c0_i32 = arith.constant 0 : i32
    %c0_i32_0 = arith.constant 0 : i32
    %c0_i32_1 = arith.constant 0 : i32
    return %c0_i32, %c0_i32_0 : i32, i32
  }
  func.func @transform_4(%arg0: i32) -> (i32, i32) {
    %c0_i32 = arith.constant 0 : i32
    %c0_i32_0 = arith.constant 0 : i32
    %c0_i32_1 = arith.constant 0 : i32
    return %c0_i32, %c0_i32_0 : i32, i32
  }
  func.func @transform_5(%arg0: i32) -> (i32, i32) {
    %c0_i32 = arith.constant 0 : i32
    %c0_i32_0 = arith.constant 0 : i32
    %c0_i32_1 = arith.constant 0 : i32
    return %c0_i32, %c0_i32_0 : i32, i32
  }
  func.func @transform_6(%arg0: i32) -> (i32, i32) {
    %c0_i32 = arith.constant 0 : i32
    %c0_i32_0 = arith.constant 0 : i32
    %c0_i32_1 = arith.constant 0 : i32
    return %c0_i32, %c0_i32_0 : i32, i32
  }
  func.func @transform_7(%arg0: i32) -> (i32, i32, i32) {
    %c0_i32 = arith.constant 0 : i32
    %c0_i32_0 = arith.constant 0 : i32
    %c0_i32_1 = arith.constant 0 : i32
    %c0_i32_2 = arith.constant 0 : i32
    return %c0_i32, %c0_i32_0, %c0_i32_1 : i32, i32, i32
  }
  func.func @transform_8(%arg0: i32) -> (i32, i32, i32) {
    %c0_i32 = arith.constant 0 : i32
    %c0_i32_0 = arith.constant 0 : i32
    %c0_i32_1 = arith.constant 0 : i32
    %c0_i32_2 = arith.constant 0 : i32
    return %c0_i32, %c0_i32_0, %c0_i32_1 : i32, i32, i32
  }
  func.func @transform_9(%arg0: i32) -> (i32, i32, i32) {
    %c0_i32 = arith.constant 0 : i32
    %c0_i32_0 = arith.constant 0 : i32
    %c0_i32_1 = arith.constant 0 : i32
    %c0_i32_2 = arith.constant 0 : i32
    return %c0_i32, %c0_i32_0, %c0_i32_1 : i32, i32, i32
  }
  func.func @transform_10(%arg0: i32) -> (i32, i32, i32) {
    %c0_i32 = arith.constant 0 : i32
    %c0_i32_0 = arith.constant 0 : i32
    %c0_i32_1 = arith.constant 0 : i32
    %c0_i32_2 = arith.constant 0 : i32
    return %c0_i32, %c0_i32_0, %c0_i32_1 : i32, i32, i32
  }
  func.func @transform_11(%arg0: i32) -> (i32, i32, i32) {
    %c0_i32 = arith.constant 0 : i32
    %c0_i32_0 = arith.constant 0 : i32
    %c0_i32_1 = arith.constant 0 : i32
    %c0_i32_2 = arith.constant 0 : i32
    return %c0_i32, %c0_i32_0, %c0_i32_1 : i32, i32, i32
  }
  func.func @transform_12(%arg0: i32) -> (i32, i32) {
    %c0_i32 = arith.constant 0 : i32
    %c0_i32_0 = arith.constant 0 : i32
    %c0_i32_1 = arith.constant 0 : i32
    return %c0_i32, %c0_i32_0 : i32, i32
  }
  func.func @transform_13(%arg0: i32) -> (i32, i32) {
    %c0_i32 = arith.constant 0 : i32
    %c0_i32_0 = arith.constant 0 : i32
    %c0_i32_1 = arith.constant 0 : i32
    return %c0_i32, %c0_i32_0 : i32, i32
  }
  func.func @transform_14(%arg0: i32) -> (i32, i32) {
    %c0_i32 = arith.constant 0 : i32
    %c0_i32_0 = arith.constant 0 : i32
    %c0_i32_1 = arith.constant 0 : i32
    return %c0_i32, %c0_i32_0 : i32, i32
  }
}

</mosaic_0001>

<bundles_post_ra>
// kernel: tpu_custom_call.1
= control target key start
LH: loop header
LB: loop body
LE: loop exit
PB: predicated region body
PF: predicated region fallthrough
CT: control target
= control target key end

     0   :  { %19 = vsyncpa [#allocation3], 0  ;;  %s2633_s0 = inlined_call_operand.vmem [shape: f32[32,32], index: 0, kind: input, shape index: {}]   ;;  %s2634_s1 = inlined_call_operand.vmem [shape: f32[32,1], index: 1, kind: input, shape index: {}]   ;;  %s2635_s2 = inlined_call_operand.hbm [shape: f32[32,32], index: 2, kind: input, shape index: {}]   ;;  %s2636_s3 = inlined_call_operand.hbm [shape: f32[2,32], index: 3, kind: input, shape index: {}]   ;;  %s2637_s4 = inlined_call_operand.hbm [shape: f32[32,128], index: 4, kind: input, shape index: {}]   ;;  %s2638_s5 = inlined_call_operand.vmem [shape: f32[128,32], index: 5, kind: input, shape index: {}]   ;;  %s2639_s6 = inlined_call_operand.hbm [shape: f32[2,32], index: 6, kind: input, shape index: {}]   ;;  %s2640_s7 = inlined_call_operand.vmem [shape: f32[6,32,32], index: 7, kind: input, shape index: {}]   ;;  %s2641_s8 = inlined_call_operand.vmem [shape: f32[2,32,64], index: 8, kind: input, shape index: {}]   ;;  %s2642_s9 = inlined_call_operand.vmem [shape: f32[2,64,32], index: 9, kind: input, shape index: {}]   ;;  %s2643_s10 = inlined_call_operand.hbm [shape: f32[2,8,32], index: 10, kind: input, shape index: {}]   ;;  %s2644_s11 = inlined_call_operand.vmem [shape: f32[2,1,64], index: 11, kind: input, shape index: {}]   ;;  %s2645_s12 = inlined_call_operand.hbm [shape: f32[32,32], index: 12, kind: input, shape index: {}]   ;;  %s2646_s13 = inlined_call_operand.vmem [shape: f32[3,32], index: 13, kind: input, shape index: {}]   ;;  %s2647_s14 = inlined_call_operand.hbm [shape: f32[2,32], index: 14, kind: output, shape index: {}]  }
   0x1   :  { %20 = vsyncpa [#allocation6], 0 }
   0x2   :  { %21 = vsyncpa [#allocation9], 0 }
   0x3   :  { %22 = vsyncpa [#allocation12], 0  ;;  %s46_s15 = sshll.u32 %s2636_s3, 4  ;;  %s47_s15 = int_to_ptr.hbm [resolvable:$true] %s46_s15 }
   0x4   :  { %23 = vsyncpa [#allocation4], 0  ;;  %s1893_s16 = smov [#allocation5]   ;;  %s72_s20 = sshll.u32 %s2639_s6, 4  ;;  %s73_s20 = int_to_ptr.hbm [resolvable:$true] %s72_s20 }
   0x5   :  { %s48_s17 = sshll.u32 %s1893_s16, 4  ;;  %s1894_s21 = smov [#allocation8]   ;;  %s49_s17 = int_to_ptr.vmem [resolvable:$true] %s48_s17 }
   0x6   :  { %51 = dma.hbm_to_vmem [thread:$0]  %s47_s15, 32, %s49_s17, [#allocation6]  }
   0x7   :  { %s74_s22 = sshll.u32 %s1894_s21, 4  ;;  %s32_s25 = sshll.u32 %s2635_s2, 4  ;;  %s75_s22 = int_to_ptr.vmem [resolvable:$true] %s74_s22  ;;  %s33_s25 = int_to_ptr.hbm [resolvable:$true] %s32_s25 }
   0x8   :  { %77 = dma.hbm_to_vmem [thread:$0]  %s73_s20, 32, %s75_s22, [#allocation9]  }
   0x9   :  { %s1895_s3 = smov [#allocation2]   ;;  %s56_s29 = sshll.u32 %s2637_s4, 4  ;;  %s57_s29 = int_to_ptr.hbm [resolvable:$true] %s56_s29 }
   0xa   :  { %s34_s26 = sshll.u32 %s1895_s3, 4  ;;  %s1896_s30 = smov 128   ;;  %s35_s26 = int_to_ptr.vmem [resolvable:$true] %s34_s26 }
   0xb   :  { %s1897_s6 = smov 8   ;;  %s1898_s15 = smov [#allocation7]  }
   0xc   :  { %40 = dma.hbm_to_vmem [thread:$0]  %s33_s25, 512, %s35_s26, [#allocation3], %s1896_s30, %s1896_s30, %s1897_s6  }
   0xd   :  { %s58_s16 = sshll.u32 %s1898_s15, 4  ;;  %s88_s2 = sshll.u32 %s2643_s10, 4  ;;  %s59_s16 = int_to_ptr.vmem [resolvable:$true] %s58_s16  ;;  %s89_s2 = int_to_ptr.hbm [resolvable:$true] %s88_s2 }
   0xe   :  { %64 = dma.hbm_to_vmem [thread:$0]  %s57_s29, 512, %s59_s16, [#allocation6], %s1896_s30, %s1896_s30, %s1897_s6  }
   0xf   :  { %s103_s21 = sshll.u32 %s2645_s12, 4  ;;  %s1899_s22 = smov [#allocation10]   ;;  %s104_s21 = int_to_ptr.hbm [resolvable:$true] %s103_s21 }
  0x10   :  { %s90_s23 = sshll.u32 %s1899_s22, 4  ;;  %s1900_s4 = smov [#allocation11]   ;;  %s91_s23 = int_to_ptr.vmem [resolvable:$true] %s90_s23 }
  0x11   :  { %96 = dma.hbm_to_vmem [thread:$0]  %s89_s2, 256, %s91_s23, [#allocation9], %s1896_s30, %s1896_s30, %s1897_s6  }
  0x12   :  { %s105_s24 = sshll.u32 %s1900_s4, 4  ;;  %s106_s24 = int_to_ptr.vmem [resolvable:$true] %s105_s24 }
  0x13   :  { %111 = dma.hbm_to_vmem [thread:$0]  %s104_s21, 512, %s106_s24, [#allocation12], %s1896_s30, %s1896_s30, %s1897_s6  }
  0x14   :  { %1883 = dma.done.wait [#allocation3], 512  }
  0x15   :  { %1884 = vsyncadd [#allocation3], 4294966784 }
  0x16   :  { %1885 = dma.done.wait [#allocation6], 544  }
  0x17   :  { %1886 = vsyncadd [#allocation6], 4294966752 }
  0x18   :  { %1887 = dma.done.wait [#allocation9], 288  }
  0x19   :  { %1888 = vsyncadd [#allocation9], 4294967008 }
  0x1a   :  { %1889 = dma.done.wait [#allocation12], 512  }
  0x1b   :  { %1890 = vsyncadd [#allocation12], 4294966784  ;;  %v142_v0 = vld [vmem:[%s2633_s0 + $0x18] sm:$0xff]  ;;  %vm151_vm0 = vcmask 261120   ;;  %v140_v2 = vld [vmem:[%s2633_s0 + $0x8] sm:$0xff]  ;;  %v1901_v16 = vmov 32.0  }
  0x1c   :  { %v146_v1 = vld [vmem:[#allocation2 + $0x18] sm:$0xff]  ;;  %v144_v4 = vld [vmem:[#allocation2 + $0x8] sm:$0xff]  ;;  %v139_v6 = vld [vmem:[%s2633_s0] sm:$0xff]  ;;  %1637 = vrcp.f32 %v1901_v16  ;;  %s1525_s26 = sshll.u32 %s2647_s14, 4  ;;  %s1526_s26 = int_to_ptr.hbm [resolvable:$true] %s1525_s26 }
  0x1d   :  { %v150_v3 = vadd.f32 %v146_v1, %v142_v0  ;;  %v148_v5 = vadd.f32 %v144_v4, %v140_v2  ;;  %v143_v7 = vld [vmem:[#allocation2] sm:$0xff]  ;;  %v141_v9 = vld [vmem:[%s2633_s0 + $0x10] sm:$0xff]  ;;  %v281_v43 = vld [vmem:[%s2640_s7 + $0x18] sm:$0xff] }
  0x1e   :  { %v145_v10 = vld [vmem:[#allocation2 + $0x10] sm:$0xff]  ;;  %v147_v12 = vadd.f32 %v143_v7, %v139_v6  ;;  %1617 = vmatpush.msra.mxu1 %v281_v43  ;;  %307 = vmatpush.msra.mxu0 %v281_v43  ;;  %v279_v45 = vld [vmem:[%s2640_s7 + $0x8] sm:$0xff]  ;;  %v278_v46 = vld [vmem:[%s2640_s7] sm:$0xff] }
  0x1f   :  { %v161_v8 = vsel %vm151_vm0, %v150_v3, 0.0  ;;  %v155_v11 = vsel %vm151_vm0, %v148_v5, 0.0  ;;  %v149_v13 = vadd.f32 %v145_v10, %v141_v9  ;;  %v280_v44 = vld [vmem:[%s2640_s7 + $0x10] sm:$0xff]  ;;  %v1545_v47 = vld [vmem:[%s2640_s7 + $0x38] sm:$0xff]  ;;  %v1543_v50 = vld [vmem:[%s2640_s7 + $0x28] sm:$0xff] }
  0x20   :  { %162 = vadd.xlane.f32.xlu0 %v161_v8  ;;  %156 = vadd.xlane.f32.xlu1 %v155_v11  ;;  %v152_v14 = vsel %vm151_vm0, %v147_v12, 0.0  ;;  %v1544_v48 = vld [vmem:[%s2640_s7 + $0x30] sm:$0xff]  ;;  %v1542_v54 = vld [vmem:[%s2640_s7 + $0x20] sm:$0xff] }
  0x21   :  { %v158_v15 = vsel %vm151_vm0, %v149_v13, 0.0  ;;  %1618 = vmatpush.msra.mxu1 %v280_v44  ;;  %308 = vmatpush.msra.mxu0 %v280_v44  ;;  %v138_v7 = vld [vmem:[#allocation5] sm:$0x3] }
  0x22   :  { %v1638_v17 = vpop.eup %1637 }
  0x23   :  { %v165_v18 = vmul.f32 32.0, %v1638_v17  ;;  %vm169_vm1 = vweird.f32 %v1638_v17  ;;  %1619 = vmatpush.msra.mxu1 %v279_v45  ;;  %309 = vmatpush.msra.mxu0 %v279_v45 }
  0x25   :  { %v166_v19 = vsub.f32 1.0, %v165_v18  ;;  %1620 = vmatpush.msra.mxu1 %v278_v46  ;;  %310 = vmatpush.msra.mxu0 %v278_v46  ;;  %v252_v18 = vperm.slane %v138_v7, 1 }
  0x27   :  { %v167_v20 = vmul.f32 %v1638_v17, %v166_v19  ;;  %342 = vmatpush.msrb.mxu1 %v1545_v47  ;;  %v2097_v47 = vld [vmem:[#allocation10] sm:$0xff] }
  0x28   :  { %153 = vadd.xlane.f32.xlu0 %v152_v14  ;;  %159 = vadd.xlane.f32.xlu1 %v158_v15  ;;  %v247_v14 = vperm.slane %v138_v7, 0  ;;  %v2156_v7 = vld [vmem:[%s2638_s5 + $0x30] sm:$0xff] }
  0x29   :  { %v168_v21 = vadd.f32 %v1638_v17, %v167_v20  ;;  %343 = vmatpush.msrb.mxu1 %v1544_v48  ;;  %v329_v48 = vperm.slane %v2097_v47, 1 }
  0x2b   :  { %v2013_v22 = vsel %vm169_vm1, %v1638_v17, %v168_v21  ;;  %344 = vmatpush.msrb.mxu1 %v1543_v50  ;;  %v2103_v50 = vld [vmem:[%s2638_s5 + $0x78] sm:$0xff] }
  0x2d   :  { %345 = vmatpush.msrb.mxu1 %v1542_v54 }
  0x93   :  { %v163_v23 = vpop.xlane.xlu0 %162  ;;  %v157_v25 = vpop.xlane.xlu1 %156 }
  0x94   :  { %v174_v24 = vmul.f32 %v2013_v22, %v163_v23  ;;  %v172_v26 = vmul.f32 %v2013_v22, %v157_v25 }
  0x96   :  { %v2017_v27 = vsub.f32 %v150_v3, %v174_v24  ;;  %v2019_v28 = vsub.f32 %v148_v5, %v172_v26 }
  0x98   :  { %v182_v29 = vmul.f32 %v2017_v27, %v2017_v27  ;;  %v180_v30 = vmul.f32 %v2019_v28, %v2019_v28 }
  0x9a   :  { %v192_v31 = vsel %vm151_vm0, %v182_v29, 0.0  ;;  %v186_v32 = vsel %vm151_vm0, %v180_v30, 0.0 }
  0x9b   :  { %193 = vadd.xlane.f32.xlu2 %v192_v31  ;;  %v154_v33 = vpop.xlane.xlu0 %153  ;;  %v160_v34 = vpop.xlane.xlu1 %159  ;;  %187 = vadd.xlane.f32.xlu0 %v186_v32 }
  0x9c   :  { %v171_v35 = vmul.f32 %v2013_v22, %v154_v33  ;;  %v173_v36 = vmul.f32 %v2013_v22, %v160_v34 }
  0x9e   :  { %v2029_v37 = vsub.f32 %v147_v12, %v171_v35  ;;  %v2031_v38 = vsub.f32 %v149_v13, %v173_v36 }
  0xa0   :  { %v179_v39 = vmul.f32 %v2029_v37, %v2029_v37  ;;  %v181_v40 = vmul.f32 %v2031_v38, %v2031_v38 }
  0xa2   :  { %v183_v41 = vsel %vm151_vm0, %v179_v39, 0.0  ;;  %v189_v42 = vsel %vm151_vm0, %v181_v40, 0.0 }
  0xa3   :  { %184 = vadd.xlane.f32.xlu2 %v183_v41  ;;  %190 = vadd.xlane.f32.xlu1 %v189_v42 }
 0x10e   :  { %v194_v49 = vpop.xlane.xlu2 %193  ;;  %v188_v52 = vpop.xlane.xlu0 %187 }
 0x10f   :  { %v198_v51 = vmul.f32 %v194_v49, %v2013_v22  ;;  %v196_v53 = vmul.f32 %v188_v52, %v2013_v22 }
 0x111   :  { %v202_v55 = vadd.f32 1e-12, %v198_v51  ;;  %v200_v56 = vadd.f32 1e-12, %v196_v53  ;;  %v2108_v53 = vld [vmem:[%s2638_s5 + $0x70] sm:$0xff] }
 0x113   :  { %1639 = vrsqrt.f32 %v202_v55  ;;  %vm239_vm3 = vweird.f32 %v202_v55  ;;  %vm219_vm5 = vweird.f32 %v200_v56 }
 0x114   :  { %1641 = vrsqrt.f32 %v200_v56 }
 0x116   :  { %v185_v57 = vpop.xlane.xlu2 %184  ;;  %v191_v58 = vpop.xlane.xlu1 %190 }
 0x117   :  { %v195_v59 = vmul.f32 %v185_v57, %v2013_v22  ;;  %v197_v60 = vmul.f32 %v191_v58, %v2013_v22 }
 0x119   :  { %v1640_v61 = vpop.eup %1639  ;;  %v199_v62 = vadd.f32 1e-12, %v195_v59  ;;  %v201_v1 = vadd.f32 1e-12, %v197_v60  ;;  %v2120_v59 = vld [vmem:[%s2638_s5 + $0x60] sm:$0xff] }
 0x11a   :  { %v1642_v63 = vpop.eup %1641  ;;  %v234_v0 = vmul.f32 %v1640_v61, %v202_v55  ;;  %vm240_vm2 = vweird.f32 %v1640_v61 }
 0x11b   :  { %v214_v2 = vmul.f32 %v1642_v63, %v200_v56  ;;  %1643 = vrsqrt.f32 %v199_v62  ;;  %vm241_vm4 = vmor %vm239_vm3, %vm240_vm2  ;;  %vm220_vm6 = vweird.f32 %v1642_v63  ;;  %vm209_vm9 = vweird.f32 %v199_v62  ;;  %v2114_v56 = vld [vmem:[%s2638_s5 + $0x68] sm:$0xff] }
 0x11c   :  { %v235_v3 = vmul.f32 %v1640_v61, %v234_v0  ;;  %1645 = vrsqrt.f32 %v201_v1  ;;  %vm221_vm8 = vmor %vm219_vm5, %vm220_vm6  ;;  %vm229_vm11 = vweird.f32 %v201_v1 }
 0x11d   :  { %v215_v5 = vmul.f32 %v1642_v63, %v214_v2 }
 0x11e   :  { %v236_v4 = vmul.f32 0.5, %v235_v3  ;;  %v2144_v3 = vld [vmem:[%s2638_s5 + $0x40] sm:$0xff] }
 0x11f   :  { %v216_v11 = vmul.f32 0.5, %v215_v5  ;;  %v2150_v5 = vld [vmem:[%s2638_s5 + $0x38] sm:$0xff] }
 0x120   :  { %v237_v6 = vsub.f32 1.5, %v236_v4 }
 0x121   :  { %v1644_v8 = vpop.eup %1643  ;;  %v217_v19 = vsub.f32 1.5, %v216_v11  ;;  %v2168_v11 = vld [vmem:[%s2638_s5 + $0x20] sm:$0xff] }
 0x122   :  { %v1646_v9 = vpop.eup %1645  ;;  %v238_v10 = vmul.f32 %v1640_v61, %v237_v6  ;;  %v204_v12 = vmul.f32 %v1644_v8, %v199_v62  ;;  %vm210_vm7 = vweird.f32 %v1644_v8 }
 0x123   :  { %v224_v13 = vmul.f32 %v1646_v9, %v201_v1  ;;  %v218_v26 = vmul.f32 %v1642_v63, %v217_v19  ;;  %vm211_vm10 = vmor %vm209_vm9, %vm210_vm7  ;;  %vm230_vm12 = vweird.f32 %v1646_v9  ;;  %v2138_v1 = vld [vmem:[%s2638_s5 + $0x48] sm:$0xff]  ;;  %v1552_v19 = vld [vmem:[%s2640_s7 + $0x50] sm:$0xff] }
 0x124   :  { %v242_v15 = vsel %vm241_vm4, %v1640_v61, %v238_v10  ;;  %v205_v16 = vmul.f32 %v1644_v8, %v204_v12  ;;  %vm231_vm13 = vmor %vm229_vm11, %vm230_vm12  ;;  %v2126_v61 = vld [vmem:[%s2638_s5 + $0x58] sm:$0xff]  ;;  %vm651_vm11 = vcmask 523264  }
 0x125   :  { %v246_v17 = vmul.f32 %v242_v15, %v2017_v27  ;;  %v225_v20 = vmul.f32 %v1646_v9, %v224_v13  ;;  %v222_v32 = vsel %vm221_vm8, %v1642_v63, %v218_v26  ;;  %v2132_v63 = vld [vmem:[%s2638_s5 + $0x50] sm:$0xff]  ;;  %v2174_v13 = vld [vmem:[%s2638_s5 + $0x18] sm:$0xff]  ;;  %v2202_v26 = vld [vmem:[#allocation7] sm:$0xff] }
 0x126   :  { %v206_v21 = vmul.f32 0.5, %v205_v16  ;;  %v244_v36 = vmul.f32 %v222_v32, %v2019_v28  ;;  %v2180_v15 = vld [vmem:[%s2638_s5 + $0x10] sm:$0xff]  ;;  %v1550_v32 = vld [vmem:[%s2640_s7 + $0x40] sm:$0xff] }
 0x127   :  { %v251_v23 = vmul.f32 %v247_v14, %v246_v17  ;;  %v226_v29 = vmul.f32 0.5, %v225_v20  ;;  %v2186_v17 = vld [vmem:[%s2638_s5 + $0x8] sm:$0xff] }
 0x128   :  { %v207_v24 = vsub.f32 1.5, %v206_v21  ;;  %v249_v40 = vmul.f32 %v247_v14, %v244_v36  ;;  %v2198_v21 = vld [vmem:[%s2638_s5] sm:$0xff] }
 0x129   :  { %v2068_v25 = vadd.f32 %v252_v18, %v251_v23  ;;  %v227_v33 = vsub.f32 1.5, %v226_v29  ;;  %v2205_v29 = vld [vmem:[#allocation7 + $0x8] sm:$0xff] }
 0x12a   :  { %v208_v30 = vmul.f32 %v1644_v8, %v207_v24 }
 0x12b   :  { %1541 = vmatmul.msk.f32.vlgmr.msra.gmra.mxu1 %vm151_vm0, %v2068_v25  ;;  %v228_v39 = vmul.f32 %v1646_v9, %v227_v33 }
 0x12c   :  { %v212_v27 = vsel %vm211_vm10, %v1644_v8, %v208_v30  ;;  %v2208_v30 = vld [vmem:[#allocation7 + $0x10] sm:$0xff] }
 0x12d   :  { %v243_v31 = vmul.f32 %v212_v27, %v2029_v37  ;;  %v232_v41 = vsel %vm231_vm13, %v1646_v9, %v228_v39  ;;  %v2080_v37 = vadd.f32 %v252_v18, %v249_v40  ;;  %v2162_v9 = vld [vmem:[%s2638_s5 + $0x28] sm:$0xff]  ;;  %v2211_v27 = vld [vmem:[#allocation7 + $0x18] sm:$0xff] }
 0x12e   :  { %v245_v42 = vmul.f32 %v232_v41, %v2031_v38 }
 0x12f   :  { %v248_v34 = vmul.f32 %v247_v14, %v243_v31  ;;  %v1551_v31 = vld [vmem:[%s2640_s7 + $0x48] sm:$0xff] }
 0x130   :  { %v250_v28 = vmul.f32 %v247_v14, %v245_v42 }
 0x131   :  { %v2073_v35 = vadd.f32 %v252_v18, %v248_v34  ;;  %v282_v34 = vperm.slane %v2097_v47, 0 }
 0x132   :  { %v2087_v43 = vadd.f32 %v252_v18, %v250_v28  ;;  %v1553_v18 = vld [vmem:[%s2640_s7 + $0x58] sm:$0xff] }
 0x133   :  { %1538 = vmatmul.msk.f32.vlgmr.msra.gmra.mxu0 %vm151_vm0, %v2073_v35  ;;  %1546 = vmatmul.msk.f32.vlgmr.msrb.gmra.mxu1 %vm151_vm0, %v2073_v35 }
 0x134   :  { %438 = vmatpush.msra.mxu3 %v1553_v18 }
 0x136   :  { %439 = vmatpush.msra.mxu3 %v1552_v19 }
 0x138   :  { %440 = vmatpush.msra.mxu3 %v1551_v31 }
 0x13a   :  { %441 = vmatpush.msra.mxu3 %v1550_v32 }
 0x13b   :  { %1539 = vmatmul.msk.f32.gmra.mxu0 %vm151_vm0, %v2080_v37  ;;  %1547 = vmatmul.msk.f32.gmra.mxu1 %vm151_vm0, %v2080_v37 }
 0x143   :  { %1540 = vmatmul.msk.f32.gmra.mxu0 %vm151_vm0, %v2087_v43  ;;  %1548 = vmatmul.msk.f32.gmra.mxu1 %vm151_vm0, %v2087_v43 }
 0x14b   :  { %1549 = vmatmul.msk.f32.gmra.mxu1 %vm151_vm0, %v2068_v25 }
 0x1a8   :  { %v2095_v44 = vpop.f32.mrf.mxu1 }
 0x1b0   :  { %v347_v38 = vpop.f32.mrf.mxu1  ;;  %v312_v33 = vpop.f32.mrf.mxu0 }
 0x1b1   :  { %v348_v57 = vadd.f32 %v347_v38, %v329_v48  ;;  %v313_v36 = vadd.f32 %v312_v33, %v282_v34 }
 0x1b3   :  { %v371_v62 = vmul.f32 %v348_v57, %v2120_v59  ;;  %v367_v6 = vmul.f32 %v348_v57, %v2144_v3  ;;  %v363_v14 = vmul.f32 %v348_v57, %v2168_v11  ;;  %v359_v24 = vmul.f32 %v348_v57, %v2198_v21 }
 0x1b8   :  { %v350_v45 = vpop.f32.mrf.mxu1  ;;  %v315_v41 = vpop.f32.mrf.mxu0 }
 0x1b9   :  { %v351_v54 = vadd.f32 %v350_v45, %v329_v48  ;;  %v316_v42 = vadd.f32 %v315_v41, %v282_v34 }
 0x1bb   :  { %v372_v60 = vmul.f32 %v351_v54, %v2114_v56  ;;  %v368_v4 = vmul.f32 %v351_v54, %v2138_v1  ;;  %v364_v12 = vmul.f32 %v351_v54, %v2162_v9  ;;  %v360_v23 = vmul.f32 %v351_v54, %v2186_v17 }
 0x1c0   :  { %v353_v46 = vpop.f32.mrf.mxu1  ;;  %v318_v45 = vpop.f32.mrf.mxu0 }
 0x1c1   :  { %v354_v51 = vadd.f32 %v353_v46, %v329_v48  ;;  %v319_v46 = vadd.f32 %v318_v45, %v282_v34 }
 0x1c3   :  { %v373_v58 = vmul.f32 %v354_v51, %v2108_v53  ;;  %v369_v2 = vmul.f32 %v354_v51, %v2132_v63  ;;  %v365_v10 = vmul.f32 %v354_v51, %v2156_v7  ;;  %v361_v20 = vmul.f32 %v354_v51, %v2180_v15 }
 0x1c4   :  { %v322_v51 = vadd.f32 %v2095_v44, %v282_v34 }
 0x1c8   :  { %v356_v49 = vpop.f32.mrf.mxu1 }
 0x1c9   :  { %v357_v52 = vadd.f32 %v356_v49, %v329_v48 }
 0x1cb   :  { %v374_v55 = vmul.f32 %v357_v52, %v2103_v50  ;;  %v370_v0 = vmul.f32 %v357_v52, %v2126_v61  ;;  %v366_v8 = vmul.f32 %v357_v52, %v2150_v5  ;;  %v362_v16 = vmul.f32 %v357_v52, %v2174_v13 }
 0x1cd   :  { %375 = vmatpush.msra.mxu2 %v374_v55  ;;  %v413_v55 = vperm.slane %v2097_v47, 2 }
 0x1cf   :  { %376 = vmatpush.msra.mxu2 %v373_v58 }
 0x1d1   :  { %377 = vmatpush.msra.mxu2 %v372_v60 }
 0x1d3   :  { %378 = vmatpush.msra.mxu2 %v371_v62 }
 0x1d5   :  { %379 = vmatpush.msra.mxu2 %v370_v0 }
 0x1d7   :  { %380 = vmatpush.msra.mxu2 %v369_v2 }
 0x1d9   :  { %381 = vmatpush.msra.mxu2 %v368_v4 }
 0x1db   :  { %382 = vmatpush.msra.mxu2 %v367_v6 }
 0x1dd   :  { %383 = vmatpush.msra.mxu2 %v366_v8 }
 0x1df   :  { %384 = vmatpush.msra.mxu2 %v365_v10 }
 0x1e1   :  { %385 = vmatpush.msra.mxu2 %v364_v12 }
 0x1e3   :  { %386 = vmatpush.msra.mxu2 %v363_v14 }
 0x1e5   :  { %387 = vmatpush.msra.mxu2 %v362_v16 }
 0x1e7   :  { %388 = vmatpush.msra.mxu2 %v361_v20 }
 0x1e9   :  { %389 = vmatpush.msra.mxu2 %v360_v23 }
 0x1eb   :  { %390 = vmatpush.msra.mxu2 %v359_v24 }
 0x1ec   :  { %391 = vmatmul.f32.vlgmr.msra.gmra.mxu2 %v2202_v26 }
 0x1f4   :  { %394 = vmatmul.f32.gmra.mxu2 %v2205_v29 }
 0x1fc   :  { %397 = vmatmul.f32.gmra.mxu2 %v2208_v30 }
 0x204   :  { %400 = vmatmul.f32.gmra.mxu2 %v2211_v27 }
 0x26f   :  { %v392_v39 = vpop.f32.mrf.mxu2 }
 0x270   :  { %v404_v40 = vmul.f32 %v392_v39, %v313_v36 }
 0x272   :  { %1554 = vmatmul.msk.f32.vlgmr.msra.gmra.mxu3 %vm151_vm0, %v404_v40 }
 0x277   :  { %v395_v28 = vpop.f32.mrf.mxu2 }
 0x278   :  { %v405_v38 = vmul.f32 %v395_v28, %v316_v42 }
 0x27a   :  { %1555 = vmatmul.msk.f32.gmra.mxu3 %vm151_vm0, %v405_v38 }
 0x27f   :  { %v398_v48 = vpop.f32.mrf.mxu2 }
 0x280   :  { %v406_v49 = vmul.f32 %v398_v48, %v319_v46  ;;  %v560_v48 = vld [vmem:[%s2641_s8 + $0x18] sm:$0xff] }
 0x281   :  { %589 = vmatpush.msrb.mxu0 %v560_v48 }
 0x282   :  { %1556 = vmatmul.msk.f32.gmra.mxu3 %vm151_vm0, %v406_v49  ;;  %v559_v49 = vld [vmem:[%s2641_s8 + $0x10] sm:$0xff] }
 0x283   :  { %590 = vmatpush.msrb.mxu0 %v559_v49 }
 0x287   :  { %v401_v52 = vpop.f32.mrf.mxu2 }
 0x288   :  { %v407_v54 = vmul.f32 %v401_v52, %v322_v51  ;;  %v558_v51 = vld [vmem:[%s2641_s8 + $0x8] sm:$0xff]  ;;  %v557_v52 = vld [vmem:[%s2641_s8] sm:$0xff] }
 0x289   :  { %591 = vmatpush.msrb.mxu0 %v558_v51 }
 0x28a   :  { %1557 = vmatmul.msk.f32.gmra.mxu3 %vm151_vm0, %v407_v54 }
 0x28b   :  { %592 = vmatpush.msrb.mxu0 %v557_v52 }
 0x2f5   :  { %v443_v57 = vpop.f32.mrf.mxu3 }
 0x2f6   :  { %v444_v58 = vadd.f32 %v443_v57, %v413_v55 }
 0x2f8   :  { %v455_v60 = vadd.f32 %v444_v58, %v2073_v35 }
 0x2fa   :  { %v459_v62 = vsel %vm151_vm0, %v455_v60, 0.0 }
 0x2fb   :  { %460 = vadd.xlane.f32.xlu2 %v459_v62 }
 0x2fd   :  { %v446_v0 = vpop.f32.mrf.mxu3 }
 0x2fe   :  { %v447_v2 = vadd.f32 %v446_v0, %v413_v55 }
 0x300   :  { %v456_v4 = vadd.f32 %v447_v2, %v2080_v37 }
 0x302   :  { %v462_v6 = vsel %vm151_vm0, %v456_v4, 0.0 }
 0x303   :  { %463 = vadd.xlane.f32.xlu0 %v462_v6 }
 0x305   :  { %v449_v44 = vpop.f32.mrf.mxu3 }
 0x306   :  { %v450_v8 = vadd.f32 %v449_v44, %v413_v55 }
 0x308   :  { %v457_v10 = vadd.f32 %v450_v8, %v2087_v43 }
 0x30a   :  { %v465_v12 = vsel %vm151_vm0, %v457_v10, 0.0 }
 0x30b   :  { %466 = vadd.xlane.f32.xlu1 %v465_v12 }
 0x30d   :  { %v452_v14 = vpop.f32.mrf.mxu3 }
 0x30e   :  { %v453_v16 = vadd.f32 %v452_v14, %v413_v55 }
 0x310   :  { %v458_v35 = vadd.f32 %v453_v16, %v2068_v25 }
 0x312   :  { %v468_v18 = vsel %vm151_vm0, %v458_v35, 0.0 }
 0x313   :  { %469 = vadd.xlane.f32.xlu2 %v468_v18  ;;  %v547_v18 = vperm.slane %v2097_v47, 3 }
 0x36e   :  { %v461_v19 = vpop.xlane.xlu2 %460 }
 0x36f   :  { %v471_v37 = vmul.f32 %v461_v19, %v2013_v22 }
 0x371   :  { %v475_v20 = vsub.f32 %v455_v60, %v471_v37 }
 0x373   :  { %v479_v23 = vmul.f32 %v475_v20, %v475_v20 }
 0x375   :  { %v483_v24 = vsel %vm151_vm0, %v479_v23, 0.0 }
 0x376   :  { %v464_v31 = vpop.xlane.xlu0 %463  ;;  %484 = vadd.xlane.f32.xlu0 %v483_v24  ;;  %v552_v24 = vperm.slane %v2097_v47, 4 }
 0x377   :  { %v472_v43 = vmul.f32 %v464_v31, %v2013_v22 }
 0x379   :  { %v2238_v32 = vsub.f32 %v456_v4, %v472_v43 }
 0x37b   :  { %v480_v33 = vmul.f32 %v2238_v32, %v2238_v32 }
 0x37d   :  { %v486_v25 = vsel %vm151_vm0, %v480_v33, 0.0 }
 0x37e   :  { %v467_v34 = vpop.xlane.xlu1 %466  ;;  %487 = vadd.xlane.f32.xlu1 %v486_v25 }
 0x37f   :  { %v473_v36 = vmul.f32 %v467_v34, %v2013_v22 }
 0x381   :  { %v2244_v39 = vsub.f32 %v457_v10, %v473_v36 }
 0x383   :  { %v481_v40 = vmul.f32 %v2244_v39, %v2244_v39 }
 0x385   :  { %v489_v41 = vsel %vm151_vm0, %v481_v40, 0.0 }
 0x386   :  { %490 = vadd.xlane.f32.xlu2 %v489_v41  ;;  %v470_v42 = vpop.xlane.xlu2 %469 }
 0x387   :  { %v474_v28 = vmul.f32 %v470_v42, %v2013_v22 }
 0x389   :  { %v2250_v38 = vsub.f32 %v458_v35, %v474_v28 }
 0x38b   :  { %v482_v45 = vmul.f32 %v2250_v38, %v2250_v38 }
 0x38d   :  { %v492_v46 = vsel %vm151_vm0, %v482_v45, 0.0 }
 0x38e   :  { %493 = vadd.xlane.f32.xlu0 %v492_v46 }
 0x3e9   :  { %v485_v54 = vpop.xlane.xlu0 %484 }
 0x3ea   :  { %v495_v55 = vmul.f32 %v485_v54, %v2013_v22 }
 0x3ec   :  { %v499_v57 = vadd.f32 1e-12, %v495_v55 }
 0x3ee   :  { %1647 = vrsqrt.f32 %v499_v57  ;;  %vm509_vm15 = vweird.f32 %v499_v57 }
 0x3f1   :  { %v488_v58 = vpop.xlane.xlu1 %487 }
 0x3f2   :  { %v496_v60 = vmul.f32 %v488_v58, %v2013_v22 }
 0x3f4   :  { %v1648_v62 = vpop.eup %1647  ;;  %v500_v0 = vadd.f32 1e-12, %v496_v60 }
 0x3f5   :  { %v504_v2 = vmul.f32 %v1648_v62, %v499_v57  ;;  %vm510_vm14 = vweird.f32 %v1648_v62 }
 0x3f6   :  { %1649 = vrsqrt.f32 %v500_v0  ;;  %vm511_vm1 = vmor %vm509_vm15, %vm510_vm14  ;;  %vm519_vm3 = vweird.f32 %v500_v0 }
 0x3f7   :  { %v505_v4 = vmul.f32 %v1648_v62, %v504_v2 }
 0x3f9   :  { %v506_v6 = vmul.f32 0.5, %v505_v4  ;;  %v491_v44 = vpop.xlane.xlu2 %490 }
 0x3fa   :  { %v497_v8 = vmul.f32 %v491_v44, %v2013_v22 }
 0x3fb   :  { %v507_v10 = vsub.f32 1.5, %v506_v6 }
 0x3fc   :  { %v1650_v12 = vpop.eup %1649  ;;  %v501_v14 = vadd.f32 1e-12, %v497_v8 }
 0x3fd   :  { %v508_v16 = vmul.f32 %v1648_v62, %v507_v10  ;;  %v514_v35 = vmul.f32 %v1650_v12, %v500_v0  ;;  %vm520_vm2 = vweird.f32 %v1650_v12 }
 0x3fe   :  { %1651 = vrsqrt.f32 %v501_v14  ;;  %vm521_vm4 = vmor %vm519_vm3, %vm520_vm2  ;;  %vm529_vm6 = vweird.f32 %v501_v14 }
 0x3ff   :  { %v512_v19 = vsel %vm511_vm1, %v1648_v62, %v508_v16  ;;  %v515_v37 = vmul.f32 %v1650_v12, %v514_v35  ;;  %v646_v16 = vld [vmem:[%s2642_s9 + $0x20] sm:$0xff]  ;;  %v645_v35 = vld [vmem:[%s2642_s9 + $0x18] sm:$0xff] }
 0x400   :  { %v543_v23 = vmul.f32 %v512_v19, %v475_v20  ;;  %v643_v19 = vld [vmem:[%s2642_s9 + $0x8] sm:$0xff] }
 0x401   :  { %v516_v31 = vmul.f32 0.5, %v515_v37  ;;  %v494_v43 = vpop.xlane.xlu0 %493  ;;  %v642_v37 = vld [vmem:[%s2642_s9] sm:$0xff] }
 0x402   :  { %v498_v33 = vmul.f32 %v494_v43, %v2013_v22  ;;  %v548_v25 = vmul.f32 %v547_v18, %v543_v23  ;;  %v1635_v23 = vld [vmem:[%s2644_s11] ss:$0 sm:$0xff] }
 0x403   :  { %v517_v34 = vsub.f32 1.5, %v516_v31 }
 0x404   :  { %v1652_v36 = vpop.eup %1651  ;;  %v502_v40 = vadd.f32 1e-12, %v498_v33  ;;  %v2273_v41 = vadd.f32 %v552_v24, %v548_v25 }
 0x405   :  { %v518_v42 = vmul.f32 %v1650_v12, %v517_v34  ;;  %v524_v28 = vmul.f32 %v1652_v36, %v501_v14  ;;  %vm530_vm5 = vweird.f32 %v1652_v36  ;;  %v648_v14 = vld [vmem:[%s2642_s9 + $0x30] sm:$0xff] }
 0x406   :  { %1653 = vrsqrt.f32 %v502_v40  ;;  %1558 = vmatmul.msk.f32.vlgmr.msrb.gmra.mxu0 %vm151_vm0, %v2273_v41  ;;  %vm531_vm7 = vmor %vm529_vm6, %vm530_vm5  ;;  %vm539_vm9 = vweird.f32 %v502_v40 }
 0x407   :  { %v522_v20 = vsel %vm521_vm4, %v1650_v12, %v518_v42  ;;  %v525_v45 = vmul.f32 %v1652_v36, %v524_v28 }
 0x408   :  { %v544_v46 = vmul.f32 %v522_v20, %v2238_v32 }
 0x409   :  { %v526_v48 = vmul.f32 0.5, %v525_v45 }
 0x40a   :  { %v549_v49 = vmul.f32 %v547_v18, %v544_v46 }
 0x40b   :  { %v527_v51 = vsub.f32 1.5, %v526_v48 }
 0x40c   :  { %v1654_v52 = vpop.eup %1653  ;;  %v2278_v54 = vadd.f32 %v552_v24, %v549_v49 }
 0x40d   :  { %v528_v55 = vmul.f32 %v1652_v36, %v527_v51  ;;  %v534_v57 = vmul.f32 %v1654_v52, %v502_v40  ;;  %vm540_vm8 = vweird.f32 %v1654_v52 }
 0x40e   :  { %1559 = vmatmul.msk.f32.gmra.mxu0 %vm151_vm0, %v2278_v54  ;;  %vm541_vm10 = vmor %vm539_vm9, %vm540_vm8 }
 0x40f   :  { %v532_v58 = vsel %vm531_vm7, %v1652_v36, %v528_v55  ;;  %v535_v60 = vmul.f32 %v1654_v52, %v534_v57 }
 0x410   :  { %v545_v62 = vmul.f32 %v532_v58, %v2244_v39  ;;  %v649_v39 = vld [vmem:[%s2642_s9 + $0x38] sm:$0xff] }
 0x411   :  { %v536_v0 = vmul.f32 0.5, %v535_v60  ;;  %672 = vmatpush.msra.mxu1 %v649_v39 }
 0x412   :  { %v550_v32 = vmul.f32 %v547_v18, %v545_v62 }
 0x413   :  { %v537_v2 = vsub.f32 1.5, %v536_v0  ;;  %673 = vmatpush.msra.mxu1 %v648_v14 }
 0x414   :  { %v2283_v4 = vadd.f32 %v552_v24, %v550_v32 }
 0x415   :  { %v538_v6 = vmul.f32 %v1654_v52, %v537_v2 }
 0x416   :  { %1560 = vmatmul.msk.f32.gmra.mxu0 %vm151_vm0, %v2283_v4 }
 0x417   :  { %v542_v44 = vsel %vm541_vm10, %v1654_v52, %v538_v6 }
 0x418   :  { %v546_v8 = vmul.f32 %v542_v44, %v2250_v38  ;;  %v647_v38 = vld [vmem:[%s2642_s9 + $0x28] sm:$0xff] }
 0x419   :  { %674 = vmatpush.msra.mxu1 %v647_v38 }
 0x41a   :  { %v551_v10 = vmul.f32 %v547_v18, %v546_v8  ;;  %v644_v18 = vld [vmem:[%s2642_s9 + $0x10] sm:$0xff] }
 0x41b   :  { %675 = vmatpush.msra.mxu1 %v646_v16 }
 0x41c   :  { %v2288_v12 = vadd.f32 %v552_v24, %v551_v10 }
 0x41d   :  { %676 = vmatpush.msra.mxu1 %v645_v35 }
 0x41e   :  { %1561 = vmatmul.msk.f32.gmra.mxu0 %vm151_vm0, %v2288_v12 }
 0x41f   :  { %677 = vmatpush.msra.mxu1 %v644_v18 }
 0x421   :  { %678 = vmatpush.msra.mxu1 %v643_v19 }
 0x423   :  { %679 = vmatpush.msra.mxu1 %v642_v37 }
 0x483   :  { %v594_v24 = vpop.f32.mrf.mxu0 }
 0x484   :  { %v595_v31 = vadd.f32 %v1635_v23, %v594_v24 }
 0x486   :  { %v610_v43 = vmul.f32 0.044715, %v595_v31  ;;  %v606_v57 = vmul.f32 0.5, %v595_v31 }
 0x488   :  { %v614_v33 = vmul.f32 %v610_v43, %v595_v31 }
 0x48a   :  { %v618_v25 = vmul.f32 %v614_v33, %v595_v31 }
 0x48b   :  { %v597_v34 = vpop.f32.mrf.mxu0 }
 0x48c   :  { %v622_v36 = vadd.f32 %v618_v25, %v595_v31  ;;  %v598_v40 = vadd.f32 %v1635_v23, %v597_v34 }
 0x48e   :  { %v626_v42 = vmul.f32 0.7978846, %v622_v36  ;;  %v611_v28 = vmul.f32 0.044715, %v598_v40  ;;  %v607_v39 = vmul.f32 0.5, %v598_v40  ;;  %v650_v36 = vperm.slane %v2097_v47, 5 }
 0x490   :  { %1655 = vtanh.f32 %v626_v42  ;;  %v615_v20 = vmul.f32 %v611_v28, %v598_v40 }
 0x492   :  { %v619_v45 = vmul.f32 %v615_v20, %v598_v40 }
 0x493   :  { %v600_v46 = vpop.f32.mrf.mxu0 }
 0x494   :  { %v601_v48 = vadd.f32 %v1635_v23, %v600_v46  ;;  %v623_v49 = vadd.f32 %v619_v45, %v598_v40 }
 0x496   :  { %v1656_v51 = vpop.eup %1655  ;;  %v612_v52 = vmul.f32 0.044715, %v601_v48  ;;  %v627_v55 = vmul.f32 0.7978846, %v623_v49  ;;  %v608_v24 = vmul.f32 0.5, %v601_v48 }
 0x497   :  { %v634_v58 = vadd.f32 1.0, %v1656_v51 }
 0x498   :  { %1657 = vtanh.f32 %v627_v55  ;;  %v616_v60 = vmul.f32 %v612_v52, %v601_v48 }
 0x499   :  { %v638_v62 = vmul.f32 %v634_v58, %v606_v57 }
 0x49a   :  { %v620_v0 = vmul.f32 %v616_v60, %v601_v48 }
 0x49b   :  { %v603_v32 = vpop.f32.mrf.mxu0  ;;  %1562 = vmatmul.msk.f32.vlgmr.msra.gmra.mxu1 %vm651_vm11, %v638_v62 }
 0x49c   :  { %v604_v2 = vadd.f32 %v1635_v23, %v603_v32  ;;  %v624_v6 = vadd.f32 %v620_v0, %v601_v48 }
 0x49e   :  { %v1658_v44 = vpop.eup %1657  ;;  %v613_v8 = vmul.f32 0.044715, %v604_v2  ;;  %v628_v10 = vmul.f32 0.7978846, %v624_v6  ;;  %v609_v33 = vmul.f32 0.5, %v604_v2 }
 0x49f   :  { %v635_v14 = vadd.f32 1.0, %v1658_v44 }
 0x4a0   :  { %1659 = vtanh.f32 %v628_v10  ;;  %v617_v38 = vmul.f32 %v613_v8, %v604_v2 }
 0x4a1   :  { %v639_v16 = vmul.f32 %v635_v14, %v607_v39 }
 0x4a2   :  { %v621_v35 = vmul.f32 %v617_v38, %v604_v2 }
 0x4a3   :  { %1563 = vmatmul.msk.f32.gmra.mxu1 %vm651_vm11, %v639_v16 }
 0x4a4   :  { %v625_v18 = vadd.f32 %v621_v35, %v604_v2 }
 0x4a6   :  { %v1660_v19 = vpop.eup %1659  ;;  %v629_v37 = vmul.f32 0.7978846, %v625_v18 }
 0x4a7   :  { %v636_v31 = vadd.f32 1.0, %v1660_v19 }
 0x4a8   :  { %1661 = vtanh.f32 %v629_v37 }
 0x4a9   :  { %v640_v43 = vmul.f32 %v636_v31, %v608_v24 }
 0x4ab   :  { %1564 = vmatmul.msk.f32.gmra.mxu1 %vm651_vm11, %v640_v43  ;;  %v1569_v43 = vld [vmem:[%s2640_s7 + $0x78] sm:$0xff] }
 0x4ac   :  { %827 = vmatpush.msrb.mxu3 %v1569_v43 }
 0x4ae   :  { %v1662_v23 = vpop.eup %1661 }
 0x4af   :  { %v637_v25 = vadd.f32 1.0, %v1662_v23  ;;  %v1577_v23 = vld [vmem:[%s2640_s7 + $0x98] sm:$0xff] }
 0x4b0   :  { %862 = vmatpush.msrb.mxu2 %v1577_v23 }
 0x4b1   :  { %v641_v34 = vmul.f32 %v637_v25, %v609_v33  ;;  %v1568_v33 = vld [vmem:[%s2640_s7 + $0x70] sm:$0xff] }
 0x4b2   :  { %v1576_v25 = vld [vmem:[%s2640_s7 + $0x90] sm:$0xff]  ;;  %828 = vmatpush.msrb.mxu3 %v1568_v33 }
 0x4b3   :  { %1565 = vmatmul.msk.f32.gmra.mxu1 %vm651_vm11, %v641_v34  ;;  %863 = vmatpush.msrb.mxu2 %v1576_v25  ;;  %v1567_v34 = vld [vmem:[%s2640_s7 + $0x68] sm:$0xff] }
 0x4b4   :  { %829 = vmatpush.msrb.mxu3 %v1567_v34 }
 0x518   :  { %v681_v40 = vpop.f32.mrf.mxu1 }
 0x519   :  { %v682_v42 = vadd.f32 %v681_v40, %v650_v36  ;;  %v1566_v40 = vld [vmem:[%s2640_s7 + $0x60] sm:$0xff] }
 0x51a   :  { %830 = vmatpush.msrb.mxu3 %v1566_v40 }
 0x51b   :  { %v693_v28 = vadd.f32 %v682_v42, %v2273_v41  ;;  %v1574_v42 = vld [vmem:[%s2640_s7 + $0x80] sm:$0xff] }
 0x51d   :  { %v697_v20 = vsel %vm151_vm0, %v693_v28, 0.0 }
 0x51e   :  { %698 = vadd.xlane.f32.xlu1 %v697_v20 }
 0x520   :  { %v684_v45 = vpop.f32.mrf.mxu1 }
 0x521   :  { %v685_v46 = vadd.f32 %v684_v45, %v650_v36 }
 0x523   :  { %v694_v48 = vadd.f32 %v685_v46, %v2278_v54 }
 0x525   :  { %v700_v49 = vsel %vm151_vm0, %v694_v48, 0.0 }
 0x526   :  { %701 = vadd.xlane.f32.xlu2 %v700_v49 }
 0x528   :  { %v687_v51 = vpop.f32.mrf.mxu1 }
 0x529   :  { %v688_v52 = vadd.f32 %v687_v51, %v650_v36 }
 0x52b   :  { %v695_v55 = vadd.f32 %v688_v52, %v2283_v4 }
 0x52d   :  { %v703_v57 = vsel %vm151_vm0, %v695_v55, 0.0 }
 0x52e   :  { %704 = vadd.xlane.f32.xlu0 %v703_v57 }
 0x530   :  { %v690_v58 = vpop.f32.mrf.mxu1 }
 0x531   :  { %v691_v60 = vadd.f32 %v690_v58, %v650_v36  ;;  %v1575_v36 = vld [vmem:[%s2640_s7 + $0x88] sm:$0xff] }
 0x532   :  { %864 = vmatpush.msrb.mxu2 %v1575_v36 }
 0x533   :  { %v696_v41 = vadd.f32 %v691_v60, %v2288_v12 }
 0x534   :  { %865 = vmatpush.msrb.mxu2 %v1574_v42 }
 0x535   :  { %v706_v62 = vsel %vm151_vm0, %v696_v41, 0.0 }
 0x536   :  { %707 = vadd.xlane.f32.xlu1 %v706_v62 }
 0x591   :  { %v699_v0 = vpop.xlane.xlu1 %698 }
 0x592   :  { %v709_v54 = vmul.f32 %v699_v0, %v2013_v22 }
 0x594   :  { %v2333_v32 = vsub.f32 %v693_v28, %v709_v54 }
 0x596   :  { %v717_v2 = vmul.f32 %v2333_v32, %v2333_v32 }
 0x598   :  { %v721_v4 = vsel %vm151_vm0, %v717_v2, 0.0 }
 0x599   :  { %722 = vadd.xlane.f32.xlu2 %v721_v4  ;;  %v702_v6 = vpop.xlane.xlu2 %701  ;;  %v785_v4 = vperm.slane %v2097_v47, 6 }
 0x59a   :  { %v710_v44 = vmul.f32 %v702_v6, %v2013_v22 }
 0x59c   :  { %v2339_v8 = vsub.f32 %v694_v48, %v710_v44 }
 0x59e   :  { %v718_v12 = vmul.f32 %v2339_v8, %v2339_v8 }
 0x5a0   :  { %v724_v10 = vsel %vm151_vm0, %v718_v12, 0.0 }
 0x5a1   :  { %v705_v39 = vpop.xlane.xlu0 %704  ;;  %725 = vadd.xlane.f32.xlu0 %v724_v10  ;;  %v790_v10 = vperm.slane %v2097_v47, 7 }
 0x5a2   :  { %v711_v14 = vmul.f32 %v705_v39, %v2013_v22 }
 0x5a4   :  { %v2345_v38 = vsub.f32 %v695_v55, %v711_v14 }
 0x5a6   :  { %v719_v16 = vmul.f32 %v2345_v38, %v2345_v38 }
 0x5a8   :  { %v727_v35 = vsel %vm151_vm0, %v719_v16, 0.0 }
 0x5a9   :  { %v708_v18 = vpop.xlane.xlu1 %707  ;;  %728 = vadd.xlane.f32.xlu1 %v727_v35 }
 0x5aa   :  { %v712_v19 = vmul.f32 %v708_v18, %v2013_v22 }
 0x5ac   :  { %v2351_v37 = vsub.f32 %v696_v41, %v712_v19 }
 0x5ae   :  { %v720_v24 = vmul.f32 %v2351_v37, %v2351_v37 }
 0x5b0   :  { %v730_v31 = vsel %vm151_vm0, %v720_v24, 0.0 }
 0x5b1   :  { %731 = vadd.xlane.f32.xlu2 %v730_v31 }
 0x60c   :  { %v723_v28 = vpop.xlane.xlu2 %722 }
 0x60d   :  { %v733_v20 = vmul.f32 %v723_v28, %v2013_v22 }
 0x60f   :  { %v737_v45 = vadd.f32 1e-12, %v733_v20 }
 0x611   :  { %1663 = vrsqrt.f32 %v737_v45  ;;  %vm747_vm13 = vweird.f32 %v737_v45 }
 0x614   :  { %v726_v46 = vpop.xlane.xlu0 %725 }
 0x615   :  { %v734_v48 = vmul.f32 %v726_v46, %v2013_v22 }
 0x617   :  { %v1664_v49 = vpop.eup %1663  ;;  %v738_v51 = vadd.f32 1e-12, %v734_v48 }
 0x618   :  { %v742_v52 = vmul.f32 %v1664_v49, %v737_v45  ;;  %vm748_vm12 = vweird.f32 %v1664_v49 }
 0x619   :  { %1665 = vrsqrt.f32 %v738_v51  ;;  %vm749_vm14 = vmor %vm747_vm13, %vm748_vm12  ;;  %vm757_vm1 = vweird.f32 %v738_v51 }
 0x61a   :  { %v743_v55 = vmul.f32 %v1664_v49, %v742_v52 }
 0x61c   :  { %v744_v57 = vmul.f32 0.5, %v743_v55  ;;  %v729_v58 = vpop.xlane.xlu1 %728 }
 0x61d   :  { %v735_v60 = vmul.f32 %v729_v58, %v2013_v22 }
 0x61e   :  { %v745_v41 = vsub.f32 1.5, %v744_v57 }
 0x61f   :  { %v1666_v62 = vpop.eup %1665  ;;  %v739_v0 = vadd.f32 1e-12, %v735_v60 }
 0x620   :  { %v746_v54 = vmul.f32 %v1664_v49, %v745_v41  ;;  %v752_v2 = vmul.f32 %v1666_v62, %v738_v51  ;;  %vm758_vm15 = vweird.f32 %v1666_v62 }
 0x621   :  { %1667 = vrsqrt.f32 %v739_v0  ;;  %vm759_vm2 = vmor %vm757_vm1, %vm758_vm15  ;;  %vm767_vm4 = vweird.f32 %v739_v0 }
 0x622   :  { %v750_v6 = vsel %vm749_vm14, %v1664_v49, %v746_v54  ;;  %v753_v44 = vmul.f32 %v1666_v62, %v752_v2  ;;  %v2414_v54 = vld [vmem:[#allocation10 + $0x8] sm:$0xff] }
 0x623   :  { %v781_v12 = vmul.f32 %v750_v6, %v2333_v32  ;;  %v849_v2 = vperm.slane %v2414_v54, 1 }
 0x624   :  { %v754_v39 = vmul.f32 0.5, %v753_v44  ;;  %v732_v14 = vpop.xlane.xlu2 %731 }
 0x625   :  { %v736_v16 = vmul.f32 %v732_v14, %v2013_v22  ;;  %v786_v35 = vmul.f32 %v785_v4, %v781_v12 }
 0x626   :  { %v755_v18 = vsub.f32 1.5, %v754_v39 }
 0x627   :  { %v1668_v19 = vpop.eup %1667  ;;  %v740_v24 = vadd.f32 1e-12, %v736_v16  ;;  %v2387_v31 = vadd.f32 %v790_v10, %v786_v35 }
 0x628   :  { %v756_v43 = vmul.f32 %v1666_v62, %v755_v18  ;;  %v762_v23 = vmul.f32 %v1668_v19, %v739_v0  ;;  %vm768_vm3 = vweird.f32 %v1668_v19 }
 0x629   :  { %1669 = vrsqrt.f32 %v740_v24  ;;  %1570 = vmatmul.msk.f32.vlgmr.msrb.gmra.mxu3 %vm151_vm0, %v2387_v31  ;;  %1578 = vmatmul.msk.f32.vlgmr.msrb.gmra.mxu2 %vm151_vm0, %v2387_v31  ;;  %vm769_vm5 = vmor %vm767_vm4, %vm768_vm3  ;;  %vm777_vm7 = vweird.f32 %v740_v24 }
 0x62a   :  { %v760_v47 = vsel %vm759_vm2, %v1666_v62, %v756_v43  ;;  %v763_v32 = vmul.f32 %v1668_v19, %v762_v23 }
 0x62b   :  { %v782_v33 = vmul.f32 %v760_v47, %v2339_v8 }
 0x62c   :  { %v764_v25 = vmul.f32 0.5, %v763_v32 }
 0x62d   :  { %v787_v34 = vmul.f32 %v785_v4, %v782_v33 }
 0x62e   :  { %v765_v36 = vsub.f32 1.5, %v764_v25 }
 0x62f   :  { %v1670_v40 = vpop.eup %1669  ;;  %v2394_v42 = vadd.f32 %v790_v10, %v787_v34 }
 0x630   :  { %v766_v28 = vmul.f32 %v1668_v19, %v765_v36  ;;  %v772_v20 = vmul.f32 %v1670_v40, %v740_v24  ;;  %vm778_vm6 = vweird.f32 %v1670_v40 }
 0x631   :  { %1571 = vmatmul.msk.f32.gmra.mxu3 %vm151_vm0, %v2394_v42  ;;  %1579 = vmatmul.msk.f32.gmra.mxu2 %vm151_vm0, %v2394_v42  ;;  %vm779_vm8 = vmor %vm777_vm7, %vm778_vm6 }
 0x632   :  { %v770_v45 = vsel %vm769_vm5, %v1668_v19, %v766_v28  ;;  %v773_v46 = vmul.f32 %v1670_v40, %v772_v20  ;;  %v933_v28 = vperm.slane %v2414_v54, 2 }
 0x633   :  { %v783_v8 = vmul.f32 %v770_v45, %v2345_v38 }
 0x634   :  { %v774_v48 = vmul.f32 0.5, %v773_v46 }
 0x635   :  { %v788_v49 = vmul.f32 %v785_v4, %v783_v8 }
 0x636   :  { %v775_v51 = vsub.f32 1.5, %v774_v48 }
 0x637   :  { %v2401_v52 = vadd.f32 %v790_v10, %v788_v49 }
 0x638   :  { %v776_v55 = vmul.f32 %v1670_v40, %v775_v51 }
 0x639   :  { %1572 = vmatmul.msk.f32.gmra.mxu3 %vm151_vm0, %v2401_v52  ;;  %1580 = vmatmul.msk.f32.gmra.mxu2 %vm151_vm0, %v2401_v52 }
 0x63a   :  { %v780_v57 = vsel %vm779_vm8, %v1670_v40, %v776_v55 }
 0x63b   :  { %v784_v58 = vmul.f32 %v780_v57, %v2351_v37 }
 0x63d   :  { %v789_v60 = vmul.f32 %v785_v4, %v784_v58 }
 0x63f   :  { %v2408_v38 = vadd.f32 %v790_v10, %v789_v60 }
 0x641   :  { %1573 = vmatmul.msk.f32.gmra.mxu3 %vm151_vm0, %v2408_v38  ;;  %1581 = vmatmul.msk.f32.gmra.mxu2 %vm151_vm0, %v2408_v38 }
 0x6ac   :  { %v867_v41 = vpop.f32.mrf.mxu2 }
 0x6ad   :  { %v868_v10 = vadd.f32 %v867_v41, %v849_v2 }
 0x6af   :  { %v891_v16 = vmul.f32 %v868_v10, %v2120_v59 }
 0x6b4   :  { %v870_v62 = vpop.f32.mrf.mxu2 }
 0x6b5   :  { %v871_v37 = vadd.f32 %v870_v62, %v849_v2 }
 0x6b7   :  { %v892_v14 = vmul.f32 %v871_v37, %v2114_v56  ;;  %v888_v19 = vmul.f32 %v871_v37, %v2138_v1  ;;  %v884_v59 = vmul.f32 %v871_v37, %v2162_v9  ;;  %v1585_v1 = vld [vmem:[%s2640_s7 + $0xb8] sm:$0xff]  ;;  %v879_v9 = vmul.f32 %v868_v10, %v2198_v21 }
 0x6b8   :  { %958 = vmatpush.msrb.mxu1 %v1585_v1  ;;  %v1592_v1 = vld [vmem:[%s2641_s8 + $0x30] sm:$0xff] }
 0x6bc   :  { %v873_v0 = vpop.f32.mrf.mxu2 }
 0x6bd   :  { %v874_v44 = vadd.f32 %v873_v0, %v849_v2 }
 0x6bf   :  { %v893_v39 = vmul.f32 %v874_v44, %v2108_v53  ;;  %v889_v18 = vmul.f32 %v874_v44, %v2132_v63  ;;  %v885_v56 = vmul.f32 %v874_v44, %v2156_v7  ;;  %v880_v7 = vmul.f32 %v871_v37, %v2186_v17 }
 0x6c0   :  { %v802_v17 = vperm.slane %v2414_v54, 0 }
 0x6c4   :  { %v876_v6 = vpop.f32.mrf.mxu2 }
 0x6c5   :  { %v877_v12 = vadd.f32 %v876_v6, %v849_v2 }
 0x6c7   :  { %v894_v4 = vmul.f32 %v877_v12, %v2103_v50  ;;  %v890_v35 = vmul.f32 %v877_v12, %v2126_v61  ;;  %v887_v50 = vmul.f32 %v868_v10, %v2144_v3  ;;  %v886_v53 = vmul.f32 %v877_v12, %v2150_v5  ;;  %v1584_v3 = vld [vmem:[%s2640_s7 + $0xb0] sm:$0xff] }
 0x6c8   :  { %v883_v61 = vmul.f32 %v868_v10, %v2168_v11  ;;  %v882_v63 = vmul.f32 %v877_v12, %v2174_v13  ;;  %v881_v5 = vmul.f32 %v874_v44, %v2180_v15  ;;  %959 = vmatpush.msrb.mxu1 %v1584_v3  ;;  %v1583_v11 = vld [vmem:[%s2640_s7 + $0xa8] sm:$0xff]  ;;  %v1582_v13 = vld [vmem:[%s2640_s7 + $0xa0] sm:$0xff]  ;;  %v832_v15 = vpop.f32.mrf.mxu3 }
 0x6c9   :  { %895 = vmatpush.msra.mxu0 %v894_v4  ;;  %v833_v21 = vadd.f32 %v832_v15, %v802_v17  ;;  %v1591_v3 = vld [vmem:[%s2641_s8 + $0x28] sm:$0xff] }
 0x6ca   :  { %960 = vmatpush.msrb.mxu1 %v1583_v11 }
 0x6cb   :  { %896 = vmatpush.msra.mxu0 %v893_v39 }
 0x6cc   :  { %961 = vmatpush.msrb.mxu1 %v1582_v13 }
 0x6cd   :  { %897 = vmatpush.msra.mxu0 %v892_v14 }
 0x6cf   :  { %898 = vmatpush.msra.mxu0 %v891_v16 }
 0x6d1   :  { %899 = vmatpush.msra.mxu0 %v890_v35 }
 0x6d3   :  { %900 = vmatpush.msra.mxu0 %v889_v18 }
 0x6d5   :  { %901 = vmatpush.msra.mxu0 %v888_v19 }
 0x6d7   :  { %902 = vmatpush.msra.mxu0 %v887_v50 }
 0x6d9   :  { %903 = vmatpush.msra.mxu0 %v886_v53 }
 0x6db   :  { %904 = vmatpush.msra.mxu0 %v885_v56 }
 0x6dd   :  { %905 = vmatpush.msra.mxu0 %v884_v59 }
 0x6df   :  { %906 = vmatpush.msra.mxu0 %v883_v61 }
 0x6e1   :  { %907 = vmatpush.msra.mxu0 %v882_v63  ;;  %v1593_v63 = vld [vmem:[%s2641_s8 + $0x38] sm:$0xff] }
 0x6e2   :  { %1111 = vmatpush.msra.mxu3 %v1593_v63  ;;  %v1602_v63 = vld [vmem:[%s2642_s9 + $0x58] sm:$0xff] }
 0x6e3   :  { %908 = vmatpush.msra.mxu0 %v881_v5  ;;  %v1590_v5 = vld [vmem:[%s2641_s8 + $0x20] sm:$0xff] }
 0x6e4   :  { %1112 = vmatpush.msra.mxu3 %v1592_v1  ;;  %v1601_v1 = vld [vmem:[%s2642_s9 + $0x50] sm:$0xff] }
 0x6e5   :  { %909 = vmatpush.msra.mxu0 %v880_v7 }
 0x6e6   :  { %1113 = vmatpush.msra.mxu3 %v1591_v3  ;;  %v1600_v3 = vld [vmem:[%s2642_s9 + $0x48] sm:$0xff] }
 0x6e7   :  { %910 = vmatpush.msra.mxu0 %v879_v9 }
 0x6e8   :  { %911 = vmatmul.f32.vlgmr.msra.gmra.mxu0 %v2202_v26  ;;  %v835_v26 = vpop.f32.mrf.mxu3  ;;  %1114 = vmatpush.msra.mxu3 %v1590_v5  ;;  %v1599_v5 = vld [vmem:[%s2642_s9 + $0x40] sm:$0xff] }
 0x6f0   :  { %914 = vmatmul.f32.gmra.mxu0 %v2205_v29  ;;  %v838_v23 = vpop.f32.mrf.mxu3 }
 0x6f1   :  { %v839_v47 = vadd.f32 %v838_v23, %v802_v17 }
 0x6f8   :  { %917 = vmatmul.f32.gmra.mxu0 %v2208_v30  ;;  %v836_v30 = vadd.f32 %v835_v26, %v802_v17  ;;  %v841_v25 = vpop.f32.mrf.mxu3 }
 0x6f9   :  { %v842_v34 = vadd.f32 %v841_v25, %v802_v17  ;;  %v1067_v25 = vperm.slane %v2414_v54, 3 }
 0x700   :  { %920 = vmatmul.f32.gmra.mxu0 %v2211_v27 }
 0x765   :  { %v912_v29 = vpop.f32.mrf.mxu0 }
 0x766   :  { %v924_v24 = vmul.f32 %v912_v29, %v833_v21 }
 0x768   :  { %1586 = vmatmul.msk.f32.vlgmr.msrb.gmra.mxu1 %vm151_vm0, %v924_v24 }
 0x76d   :  { %v915_v27 = vpop.f32.mrf.mxu0 }
 0x76e   :  { %v925_v43 = vmul.f32 %v915_v27, %v836_v30 }
 0x770   :  { %1587 = vmatmul.msk.f32.gmra.mxu1 %vm151_vm0, %v925_v43 }
 0x775   :  { %v918_v32 = vpop.f32.mrf.mxu0 }
 0x776   :  { %v926_v33 = vmul.f32 %v918_v32, %v839_v47 }
 0x778   :  { %1588 = vmatmul.msk.f32.gmra.mxu1 %vm151_vm0, %v926_v33 }
 0x77d   :  { %v921_v36 = vpop.f32.mrf.mxu0 }
 0x77e   :  { %v927_v40 = vmul.f32 %v921_v36, %v842_v34 }
 0x780   :  { %1589 = vmatmul.msk.f32.gmra.mxu1 %vm151_vm0, %v927_v40 }
 0x7e5   :  { %v963_v20 = vpop.f32.mrf.mxu1 }
 0x7e6   :  { %v964_v45 = vadd.f32 %v963_v20, %v933_v28 }
 0x7e8   :  { %v975_v46 = vadd.f32 %v964_v45, %v2387_v31 }
 0x7ea   :  { %v979_v8 = vsel %vm151_vm0, %v975_v46, 0.0 }
 0x7eb   :  { %980 = vadd.xlane.f32.xlu0 %v979_v8 }
 0x7ed   :  { %v966_v48 = vpop.f32.mrf.mxu1 }
 0x7ee   :  { %v967_v49 = vadd.f32 %v966_v48, %v933_v28 }
 0x7f0   :  { %v976_v51 = vadd.f32 %v967_v49, %v2394_v42 }
 0x7f2   :  { %v982_v55 = vsel %vm151_vm0, %v976_v51, 0.0 }
 0x7f3   :  { %983 = vadd.xlane.f32.xlu1 %v982_v55 }
 0x7f5   :  { %v969_v57 = vpop.f32.mrf.mxu1 }
 0x7f6   :  { %v970_v58 = vadd.f32 %v969_v57, %v933_v28 }
 0x7f8   :  { %v977_v60 = vadd.f32 %v970_v58, %v2401_v52 }
 0x7fa   :  { %v985_v41 = vsel %vm151_vm0, %v977_v60, 0.0 }
 0x7fb   :  { %986 = vadd.xlane.f32.xlu2 %v985_v41 }
 0x7fd   :  { %v972_v62 = vpop.f32.mrf.mxu1 }
 0x7fe   :  { %v973_v0 = vadd.f32 %v972_v62, %v933_v28  ;;  %v1072_v28 = vperm.slane %v2414_v54, 4 }
 0x800   :  { %v978_v31 = vadd.f32 %v973_v0, %v2408_v38 }
 0x802   :  { %v988_v2 = vsel %vm151_vm0, %v978_v31, 0.0 }
 0x803   :  { %989 = vadd.xlane.f32.xlu0 %v988_v2 }
 0x85e   :  { %v981_v6 = vpop.xlane.xlu0 %980 }
 0x85f   :  { %v991_v42 = vmul.f32 %v981_v6, %v2013_v22 }
 0x861   :  { %v995_v44 = vsub.f32 %v975_v46, %v991_v42 }
 0x863   :  { %v999_v12 = vmul.f32 %v995_v44, %v995_v44 }
 0x865   :  { %v1003_v37 = vsel %vm151_vm0, %v999_v12, 0.0 }
 0x866   :  { %1004 = vadd.xlane.f32.xlu1 %v1003_v37  ;;  %v984_v4 = vpop.xlane.xlu1 %983 }
 0x867   :  { %v992_v52 = vmul.f32 %v984_v4, %v2013_v22 }
 0x869   :  { %v2466_v10 = vsub.f32 %v976_v51, %v992_v52 }
 0x86b   :  { %v1000_v39 = vmul.f32 %v2466_v10, %v2466_v10 }
 0x86d   :  { %v1006_v38 = vsel %vm151_vm0, %v1000_v39, 0.0 }
 0x86e   :  { %1007 = vadd.xlane.f32.xlu2 %v1006_v38  ;;  %v987_v14 = vpop.xlane.xlu2 %986 }
 0x86f   :  { %v993_v16 = vmul.f32 %v987_v14, %v2013_v22 }
 0x871   :  { %v2472_v35 = vsub.f32 %v977_v60, %v993_v16 }
 0x873   :  { %v1001_v18 = vmul.f32 %v2472_v35, %v2472_v35 }
 0x875   :  { %v1009_v19 = vsel %vm151_vm0, %v1001_v18, 0.0 }
 0x876   :  { %1010 = vadd.xlane.f32.xlu0 %v1009_v19  ;;  %v990_v50 = vpop.xlane.xlu0 %989 }
 0x877   :  { %v994_v53 = vmul.f32 %v990_v50, %v2013_v22 }
 0x879   :  { %v2478_v56 = vsub.f32 %v978_v31, %v994_v53 }
 0x87b   :  { %v1002_v59 = vmul.f32 %v2478_v56, %v2478_v56 }
 0x87d   :  { %v1012_v61 = vsel %vm151_vm0, %v1002_v59, 0.0  ;;  %v1605_v59 = vld [vmem:[%s2642_s9 + $0x70] sm:$0xff] }
 0x87e   :  { %1013 = vadd.xlane.f32.xlu1 %v1012_v61  ;;  %v1603_v61 = vld [vmem:[%s2642_s9 + $0x60] sm:$0xff] }
 0x8d9   :  { %v1005_v7 = vpop.xlane.xlu1 %1004 }
 0x8da   :  { %v1015_v9 = vmul.f32 %v1005_v7, %v2013_v22  ;;  %v1636_v7 = vld [vmem:[%s2644_s11 + $0x1] ss:$0 sm:$0xff] }
 0x8dc   :  { %v1019_v11 = vadd.f32 1e-12, %v1015_v9 }
 0x8de   :  { %1671 = vrsqrt.f32 %v1019_v11  ;;  %vm1029_vm10 = vweird.f32 %v1019_v11 }
 0x8e1   :  { %v1008_v13 = vpop.xlane.xlu2 %1007 }
 0x8e2   :  { %v1016_v15 = vmul.f32 %v1008_v13, %v2013_v22 }
 0x8e4   :  { %v1672_v17 = vpop.eup %1671  ;;  %v1020_v21 = vadd.f32 1e-12, %v1016_v15 }
 0x8e5   :  { %v1024_v26 = vmul.f32 %v1672_v17, %v1019_v11  ;;  %vm1030_vm9 = vweird.f32 %v1672_v17 }
 0x8e6   :  { %1673 = vrsqrt.f32 %v1020_v21  ;;  %vm1031_vm12 = vmor %vm1029_vm10, %vm1030_vm9  ;;  %vm1039_vm14 = vweird.f32 %v1020_v21 }
 0x8e7   :  { %v1025_v29 = vmul.f32 %v1672_v17, %v1024_v26 }
 0x8e9   :  { %v1026_v24 = vmul.f32 0.5, %v1025_v29  ;;  %v1011_v30 = vpop.xlane.xlu0 %1010 }
 0x8ea   :  { %v1017_v27 = vmul.f32 %v1011_v30, %v2013_v22 }
 0x8eb   :  { %v1027_v43 = vsub.f32 1.5, %v1026_v24 }
 0x8ec   :  { %v1674_v23 = vpop.eup %1673  ;;  %v1021_v47 = vadd.f32 1e-12, %v1017_v27 }
 0x8ed   :  { %v1028_v32 = vmul.f32 %v1672_v17, %v1027_v43  ;;  %v1034_v33 = vmul.f32 %v1674_v23, %v1020_v21  ;;  %vm1040_vm13 = vweird.f32 %v1674_v23 }
 0x8ee   :  { %1675 = vrsqrt.f32 %v1021_v47  ;;  %vm1041_vm15 = vmor %vm1039_vm14, %vm1040_vm13  ;;  %vm1049_vm2 = vweird.f32 %v1021_v47 }
 0x8ef   :  { %v1032_v34 = vsel %vm1031_vm12, %v1672_v17, %v1028_v32  ;;  %v1035_v36 = vmul.f32 %v1674_v23, %v1034_v33 }
 0x8f0   :  { %v1063_v40 = vmul.f32 %v1032_v34, %v995_v44 }
 0x8f1   :  { %v1036_v20 = vmul.f32 0.5, %v1035_v36  ;;  %v1014_v45 = vpop.xlane.xlu1 %1013 }
 0x8f2   :  { %v1068_v46 = vmul.f32 %v1067_v25, %v1063_v40  ;;  %v1018_v8 = vmul.f32 %v1014_v45, %v2013_v22 }
 0x8f3   :  { %v1037_v48 = vsub.f32 1.5, %v1036_v20 }
 0x8f4   :  { %v1676_v49 = vpop.eup %1675  ;;  %v1022_v51 = vadd.f32 1e-12, %v1018_v8  ;;  %v2501_v55 = vadd.f32 %v1072_v28, %v1068_v46 }
 0x8f5   :  { %v1038_v57 = vmul.f32 %v1674_v23, %v1037_v48  ;;  %v1044_v58 = vmul.f32 %v1676_v49, %v1021_v47  ;;  %vm1050_vm1 = vweird.f32 %v1676_v49 }
 0x8f6   :  { %1677 = vrsqrt.f32 %v1022_v51  ;;  %1595 = vmatmul.msk.f32.vlgmr.msra.gmra.mxu3 %vm151_vm0, %v2501_v55  ;;  %vm1051_vm3 = vmor %vm1049_vm2, %vm1050_vm1  ;;  %vm1059_vm5 = vweird.f32 %v1022_v51 }
 0x8f7   :  { %v1042_v60 = vsel %vm1041_vm15, %v1674_v23, %v1038_v57  ;;  %v1045_v41 = vmul.f32 %v1676_v49, %v1044_v58 }
 0x8f8   :  { %v1064_v62 = vmul.f32 %v1042_v60, %v2466_v10 }
 0x8f9   :  { %v1046_v0 = vmul.f32 0.5, %v1045_v41 }
 0x8fa   :  { %v1069_v31 = vmul.f32 %v1067_v25, %v1064_v62 }
 0x8fb   :  { %v1047_v2 = vsub.f32 1.5, %v1046_v0 }
 0x8fc   :  { %v1678_v6 = vpop.eup %1677  ;;  %v2506_v42 = vadd.f32 %v1072_v28, %v1069_v31 }
 0x8fd   :  { %v1048_v44 = vmul.f32 %v1676_v49, %v1047_v2  ;;  %v1054_v12 = vmul.f32 %v1678_v6, %v1022_v51  ;;  %vm1060_vm4 = vweird.f32 %v1678_v6 }
 0x8fe   :  { %1596 = vmatmul.msk.f32.gmra.mxu3 %vm151_vm0, %v2506_v42  ;;  %vm1061_vm6 = vmor %vm1059_vm5, %vm1060_vm4  ;;  %vm1390_vm4 = vcmask 7168  }
 0x8ff   :  { %v1052_v37 = vsel %vm1051_vm3, %v1676_v49, %v1048_v44  ;;  %v1055_v4 = vmul.f32 %v1678_v6, %v1054_v12 }
 0x900   :  { %v1065_v52 = vmul.f32 %v1052_v37, %v2472_v35  ;;  %v1606_v35 = vld [vmem:[%s2642_s9 + $0x78] sm:$0xff] }
 0x901   :  { %v1056_v39 = vmul.f32 0.5, %v1055_v4  ;;  %1194 = vmatpush.msra.mxu2 %v1606_v35 }
 0x902   :  { %v1070_v10 = vmul.f32 %v1067_v25, %v1065_v52 }
 0x903   :  { %v1057_v38 = vsub.f32 1.5, %v1056_v39  ;;  %1195 = vmatpush.msra.mxu2 %v1605_v59 }
 0x904   :  { %v2511_v14 = vadd.f32 %v1072_v28, %v1070_v10 }
 0x905   :  { %v1058_v16 = vmul.f32 %v1678_v6, %v1057_v38  ;;  %v1173_v38 = vperm.slane %v2414_v54, 5 }
 0x906   :  { %1597 = vmatmul.msk.f32.gmra.mxu3 %vm151_vm0, %v2511_v14 }
 0x907   :  { %v1062_v18 = vsel %vm1061_vm6, %v1678_v6, %v1058_v16 }
 0x908   :  { %v1066_v19 = vmul.f32 %v1062_v18, %v2478_v56  ;;  %v1604_v56 = vld [vmem:[%s2642_s9 + $0x68] sm:$0xff] }
 0x909   :  { %1196 = vmatpush.msra.mxu2 %v1604_v56 }
 0x90a   :  { %v1071_v50 = vmul.f32 %v1067_v25, %v1066_v19 }
 0x90b   :  { %1197 = vmatpush.msra.mxu2 %v1603_v61 }
 0x90c   :  { %v2516_v53 = vadd.f32 %v1072_v28, %v1071_v50 }
 0x90d   :  { %1198 = vmatpush.msra.mxu2 %v1602_v63 }
 0x90e   :  { %1598 = vmatmul.msk.f32.gmra.mxu3 %vm151_vm0, %v2516_v53 }
 0x90f   :  { %1199 = vmatpush.msra.mxu2 %v1601_v1 }
 0x911   :  { %1200 = vmatpush.msra.mxu2 %v1600_v3 }
 0x913   :  { %1201 = vmatpush.msra.mxu2 %v1599_v5 }
 0x979   :  { %v1116_v9 = vpop.f32.mrf.mxu3 }
 0x97a   :  { %v1117_v11 = vadd.f32 %v1636_v7, %v1116_v9 }
 0x97c   :  { %v1132_v13 = vmul.f32 0.044715, %v1117_v11  ;;  %v1128_v36 = vmul.f32 0.5, %v1117_v11 }
 0x97e   :  { %v1136_v15 = vmul.f32 %v1132_v13, %v1117_v11 }
 0x980   :  { %v1140_v17 = vmul.f32 %v1136_v15, %v1117_v11 }
 0x981   :  { %v1119_v21 = vpop.f32.mrf.mxu3 }
 0x982   :  { %v1144_v26 = vadd.f32 %v1140_v17, %v1117_v11  ;;  %v1120_v29 = vadd.f32 %v1636_v7, %v1119_v21 }
 0x984   :  { %v1148_v24 = vmul.f32 0.7978846, %v1144_v26  ;;  %v1133_v30 = vmul.f32 0.044715, %v1120_v29  ;;  %v1129_v58 = vmul.f32 0.5, %v1120_v29 }
 0x986   :  { %1679 = vtanh.f32 %v1148_v24  ;;  %v1137_v27 = vmul.f32 %v1133_v30, %v1120_v29 }
 0x988   :  { %v1141_v43 = vmul.f32 %v1137_v27, %v1120_v29 }
 0x989   :  { %v1122_v23 = vpop.f32.mrf.mxu3 }
 0x98a   :  { %v1123_v47 = vadd.f32 %v1636_v7, %v1122_v23  ;;  %v1145_v32 = vadd.f32 %v1141_v43, %v1120_v29 }
 0x98c   :  { %v1680_v33 = vpop.eup %1679  ;;  %v1134_v25 = vmul.f32 0.044715, %v1123_v47  ;;  %v1149_v34 = vmul.f32 0.7978846, %v1145_v32  ;;  %v1130_v44 = vmul.f32 0.5, %v1123_v47 }
 0x98d   :  { %v1156_v40 = vadd.f32 1.0, %v1680_v33 }
 0x98e   :  { %1681 = vtanh.f32 %v1149_v34  ;;  %v1138_v28 = vmul.f32 %v1134_v25, %v1123_v47 }
 0x98f   :  { %v1160_v20 = vmul.f32 %v1156_v40, %v1128_v36  ;;  %v1321_v40 = vld [vmem:[#allocation11 + $0x18] sm:$0xff] }
 0x990   :  { %v1142_v45 = vmul.f32 %v1138_v28, %v1123_v47  ;;  %1347 = vmatpush.msrb.mxu0 %v1321_v40  ;;  %v1320_v28 = vld [vmem:[#allocation11 + $0x10] sm:$0xff] }
 0x991   :  { %v1125_v46 = vpop.f32.mrf.mxu3  ;;  %1607 = vmatmul.msk.f32.vlgmr.msra.gmra.mxu2 %vm651_vm11, %v1160_v20  ;;  %v1319_v20 = vld [vmem:[#allocation11 + $0x8] sm:$0xff] }
 0x992   :  { %v1126_v8 = vadd.f32 %v1636_v7, %v1125_v46  ;;  %v1146_v48 = vadd.f32 %v1142_v45, %v1123_v47  ;;  %1348 = vmatpush.msrb.mxu0 %v1320_v28  ;;  %v1318_v45 = vld [vmem:[#allocation11] sm:$0xff] }
 0x994   :  { %v1682_v49 = vpop.eup %1681  ;;  %v1135_v51 = vmul.f32 0.044715, %v1126_v8  ;;  %v1150_v57 = vmul.f32 0.7978846, %v1146_v48  ;;  %v1131_v52 = vmul.f32 0.5, %v1126_v8  ;;  %1349 = vmatpush.msrb.mxu0 %v1319_v20 }
 0x995   :  { %v1157_v60 = vadd.f32 1.0, %v1682_v49 }
 0x996   :  { %1683 = vtanh.f32 %v1150_v57  ;;  %v1139_v41 = vmul.f32 %v1135_v51, %v1126_v8  ;;  %1350 = vmatpush.msrb.mxu0 %v1318_v45 }
 0x997   :  { %v1161_v62 = vmul.f32 %v1157_v60, %v1129_v58 }
 0x998   :  { %v1143_v0 = vmul.f32 %v1139_v41, %v1126_v8 }
 0x999   :  { %1608 = vmatmul.msk.f32.gmra.mxu2 %vm651_vm11, %v1161_v62 }
 0x99a   :  { %v1147_v31 = vadd.f32 %v1143_v0, %v1126_v8 }
 0x99c   :  { %v1684_v2 = vpop.eup %1683  ;;  %v1151_v6 = vmul.f32 0.7978846, %v1147_v31 }
 0x99d   :  { %v1158_v12 = vadd.f32 1.0, %v1684_v2 }
 0x99e   :  { %1685 = vtanh.f32 %v1151_v6 }
 0x99f   :  { %v1162_v37 = vmul.f32 %v1158_v12, %v1130_v44 }
 0x9a1   :  { %1609 = vmatmul.msk.f32.gmra.mxu2 %vm651_vm11, %v1162_v37 }
 0x9a4   :  { %v1686_v4 = vpop.eup %1685 }
 0x9a5   :  { %v1159_v39 = vadd.f32 1.0, %v1686_v4  ;;  %v1307_v4 = vperm.slane %v2414_v54, 6 }
 0x9a7   :  { %v1163_v10 = vmul.f32 %v1159_v39, %v1131_v52 }
 0x9a9   :  { %1610 = vmatmul.msk.f32.gmra.mxu2 %vm651_vm11, %v1163_v10 }
 0xa14   :  { %v1203_v16 = vpop.f32.mrf.mxu2 }
 0xa15   :  { %v1204_v18 = vadd.f32 %v1203_v16, %v1173_v38 }
 0xa17   :  { %v1215_v19 = vadd.f32 %v1204_v18, %v2501_v55 }
 0xa19   :  { %v1219_v50 = vsel %vm151_vm0, %v1215_v19, 0.0 }
 0xa1a   :  { %1220 = vadd.xlane.f32.xlu2 %v1219_v50 }
 0xa1c   :  { %v1206_v35 = vpop.f32.mrf.mxu2 }
 0xa1d   :  { %v1207_v59 = vadd.f32 %v1206_v35, %v1173_v38 }
 0xa1f   :  { %v1216_v56 = vadd.f32 %v1207_v59, %v2506_v42 }
 0xa21   :  { %v1222_v61 = vsel %vm151_vm0, %v1216_v56, 0.0 }
 0xa22   :  { %1223 = vadd.xlane.f32.xlu0 %v1222_v61 }
 0xa24   :  { %v1209_v63 = vpop.f32.mrf.mxu2 }
 0xa25   :  { %v1210_v1 = vadd.f32 %v1209_v63, %v1173_v38 }
 0xa27   :  { %v1217_v3 = vadd.f32 %v1210_v1, %v2511_v14 }
 0xa29   :  { %v1225_v5 = vsel %vm151_vm0, %v1217_v3, 0.0 }
 0xa2a   :  { %1226 = vadd.xlane.f32.xlu1 %v1225_v5 }
 0xa2c   :  { %v1212_v7 = vpop.f32.mrf.mxu2 }
 0xa2d   :  { %v1213_v9 = vadd.f32 %v1212_v7, %v1173_v38  ;;  %v1312_v38 = vperm.slane %v2414_v54, 7 }
 0xa2f   :  { %v1218_v55 = vadd.f32 %v1213_v9, %v2516_v53 }
 0xa31   :  { %v1228_v11 = vsel %vm151_vm0, %v1218_v55, 0.0 }
 0xa32   :  { %1229 = vadd.xlane.f32.xlu2 %v1228_v11 }
 0xa8d   :  { %v1221_v13 = vpop.xlane.xlu2 %1220 }
 0xa8e   :  { %v1231_v42 = vmul.f32 %v1221_v13, %v2013_v22 }
 0xa90   :  { %v1235_v15 = vsub.f32 %v1215_v19, %v1231_v42 }
 0xa92   :  { %v1239_v17 = vmul.f32 %v1235_v15, %v1235_v15 }
 0xa94   :  { %v1243_v21 = vsel %vm151_vm0, %v1239_v17, 0.0 }
 0xa95   :  { %1244 = vadd.xlane.f32.xlu0 %v1243_v21  ;;  %v1224_v26 = vpop.xlane.xlu0 %1223 }
 0xa96   :  { %v1232_v14 = vmul.f32 %v1224_v26, %v2013_v22 }
 0xa98   :  { %v2563_v29 = vsub.f32 %v1216_v56, %v1232_v14 }
 0xa9a   :  { %v1240_v24 = vmul.f32 %v2563_v29, %v2563_v29 }
 0xa9c   :  { %v1246_v53 = vsel %vm151_vm0, %v1240_v24, 0.0 }
 0xa9d   :  { %v1227_v30 = vpop.xlane.xlu1 %1226  ;;  %1247 = vadd.xlane.f32.xlu1 %v1246_v53 }
 0xa9e   :  { %v1233_v27 = vmul.f32 %v1227_v30, %v2013_v22 }
 0xaa0   :  { %v2569_v43 = vsub.f32 %v1217_v3, %v1233_v27 }
 0xaa2   :  { %v1241_v23 = vmul.f32 %v2569_v43, %v2569_v43 }
 0xaa4   :  { %v1249_v47 = vsel %vm151_vm0, %v1241_v23, 0.0 }
 0xaa5   :  { %v1230_v32 = vpop.xlane.xlu2 %1229  ;;  %1250 = vadd.xlane.f32.xlu2 %v1249_v47 }
 0xaa6   :  { %v1234_v33 = vmul.f32 %v1230_v32, %v2013_v22 }
 0xaa8   :  { %v2575_v25 = vsub.f32 %v1218_v55, %v1234_v33 }
 0xaaa   :  { %v1242_v34 = vmul.f32 %v2575_v25, %v2575_v25 }
 0xaac   :  { %v1252_v36 = vsel %vm151_vm0, %v1242_v34, 0.0 }
 0xaad   :  { %1253 = vadd.xlane.f32.xlu0 %v1252_v36 }
 0xb08   :  { %v1245_v46 = vpop.xlane.xlu0 %1244 }
 0xb09   :  { %v1255_v8 = vmul.f32 %v1245_v46, %v2013_v22 }
 0xb0b   :  { %v1259_v48 = vadd.f32 1e-12, %v1255_v8 }
 0xb0d   :  { %1687 = vrsqrt.f32 %v1259_v48  ;;  %vm1269_vm7 = vweird.f32 %v1259_v48 }
 0xb10   :  { %v1248_v49 = vpop.xlane.xlu1 %1247 }
 0xb11   :  { %v1256_v51 = vmul.f32 %v1248_v49, %v2013_v22 }
 0xb13   :  { %v1688_v57 = vpop.eup %1687  ;;  %v1260_v58 = vadd.f32 1e-12, %v1256_v51 }
 0xb14   :  { %v1264_v60 = vmul.f32 %v1688_v57, %v1259_v48  ;;  %vm1270_vm11 = vweird.f32 %v1688_v57 }
 0xb15   :  { %1689 = vrsqrt.f32 %v1260_v58  ;;  %vm1271_vm8 = vmor %vm1269_vm7, %vm1270_vm11  ;;  %vm1279_vm10 = vweird.f32 %v1260_v58  ;;  %vm1516_vm7 = vcmask 254976  }
 0xb16   :  { %v1265_v41 = vmul.f32 %v1688_v57, %v1264_v60 }
 0xb18   :  { %v1266_v62 = vmul.f32 0.5, %v1265_v41  ;;  %v1251_v0 = vpop.xlane.xlu2 %1250 }
 0xb19   :  { %v1257_v31 = vmul.f32 %v1251_v0, %v2013_v22 }
 0xb1a   :  { %v1267_v2 = vsub.f32 1.5, %v1266_v62 }
 0xb1b   :  { %v1690_v6 = vpop.eup %1689  ;;  %v1261_v44 = vadd.f32 1e-12, %v1257_v31 }
 0xb1c   :  { %v1268_v12 = vmul.f32 %v1688_v57, %v1267_v2  ;;  %v1274_v37 = vmul.f32 %v1690_v6, %v1260_v58  ;;  %vm1280_vm9 = vweird.f32 %v1690_v6 }
 0xb1d   :  { %1691 = vrsqrt.f32 %v1261_v44  ;;  %vm1281_vm12 = vmor %vm1279_vm10, %vm1280_vm9  ;;  %vm1289_vm14 = vweird.f32 %v1261_v44 }
 0xb1e   :  { %v1272_v52 = vsel %vm1271_vm8, %v1688_v57, %v1268_v12  ;;  %v1275_v39 = vmul.f32 %v1690_v6, %v1274_v37 }
 0xb1f   :  { %v1303_v10 = vmul.f32 %v1272_v52, %v1235_v15 }
 0xb20   :  { %v1276_v16 = vmul.f32 0.5, %v1275_v39  ;;  %v1254_v18 = vpop.xlane.xlu0 %1253 }
 0xb21   :  { %v1308_v19 = vmul.f32 %v1307_v4, %v1303_v10  ;;  %v1258_v50 = vmul.f32 %v1254_v18, %v2013_v22 }
 0xb22   :  { %v1277_v35 = vsub.f32 1.5, %v1276_v16 }
 0xb23   :  { %v1692_v59 = vpop.eup %1691  ;;  %v1262_v56 = vadd.f32 1e-12, %v1258_v50  ;;  %v2586_v61 = vadd.f32 %v1312_v38, %v1308_v19 }
 0xb24   :  { %v1278_v63 = vmul.f32 %v1690_v6, %v1277_v35  ;;  %v1284_v1 = vmul.f32 %v1692_v59, %v1261_v44  ;;  %vm1290_vm13 = vweird.f32 %v1692_v59  ;;  %v1902_v44 = vmov 0  }
 0xb25   :  { %1693 = vrsqrt.f32 %v1262_v56  ;;  %1611 = vmatmul.msk.f32.vlgmr.msrb.gmra.mxu0 %vm151_vm0, %v2586_v61  ;;  %vm1291_vm15 = vmor %vm1289_vm14, %vm1290_vm13  ;;  %vm1299_vm2 = vweird.f32 %v1262_v56  ;;  %1634 = vset.pattern.permute.xlu1 %v1902_v44 }
 0xb26   :  { %v1282_v54 = vsel %vm1281_vm12, %v1690_v6, %v1278_v63  ;;  %v1285_v3 = vmul.f32 %v1692_v59, %v1284_v1  ;;  %1633 = vset.pattern.permute.xlu0 %v1902_v44  ;;  %1632 = vset.pattern.permute.xlu2 %v1902_v44 }
 0xb27   :  { %v1304_v5 = vmul.f32 %v1282_v54, %v2563_v29 }
 0xb28   :  { %v1286_v7 = vmul.f32 0.5, %v1285_v3 }
 0xb29   :  { %v1309_v22 = vmul.f32 %v1307_v4, %v1304_v5 }
 0xb2a   :  { %v1287_v9 = vsub.f32 1.5, %v1286_v7 }
 0xb2b   :  { %v1694_v55 = vpop.eup %1693  ;;  %v2591_v11 = vadd.f32 %v1312_v38, %v1309_v22 }
 0xb2c   :  { %v1288_v13 = vmul.f32 %v1692_v59, %v1287_v9  ;;  %v1294_v42 = vmul.f32 %v1694_v55, %v1262_v56  ;;  %vm1300_vm1 = vweird.f32 %v1694_v55 }
 0xb2d   :  { %1612 = vmatmul.msk.f32.gmra.mxu0 %vm151_vm0, %v2591_v11  ;;  %vm1301_vm3 = vmor %vm1299_vm2, %vm1300_vm1 }
 0xb2e   :  { %v1292_v15 = vsel %vm1291_vm15, %v1692_v59, %v1288_v13  ;;  %v1295_v17 = vmul.f32 %v1694_v55, %v1294_v42 }
 0xb2f   :  { %v1305_v21 = vmul.f32 %v1292_v15, %v2569_v43  ;;  %v1317_v43 = vld [vmem:[%s2646_s13] sm:$0x7] }
 0xb30   :  { %v1296_v26 = vmul.f32 0.5, %v1295_v17  ;;  %v1322_v32 = vperm.slane %v1317_v43, 0  ;;  %v1368_v36 = vperm.slane %v1317_v43, 1  ;;  %v1385_v37 = vperm.slane %v1317_v43, 2 }
 0xb31   :  { %v1310_v14 = vmul.f32 %v1307_v4, %v1305_v21 }
 0xb32   :  { %v1297_v29 = vsub.f32 1.5, %v1296_v26 }
 0xb33   :  { %v2596_v24 = vadd.f32 %v1312_v38, %v1310_v14  ;;  %v1419_v14 = vld [vmem:[%s2634_s1 + $0x18] sm:$0xff] }
 0xb34   :  { %v1298_v53 = vmul.f32 %v1694_v55, %v1297_v29  ;;  %v1418_v29 = vld [vmem:[%s2634_s1 + $0x10] sm:$0xff] }
 0xb35   :  { %1613 = vmatmul.msk.f32.gmra.mxu0 %vm151_vm0, %v2596_v24 }
 0xb36   :  { %v1302_v30 = vsel %vm1301_vm3, %v1694_v55, %v1298_v53 }
 0xb37   :  { %v1306_v27 = vmul.f32 %v1302_v30, %v2575_v25  ;;  %v1417_v30 = vld [vmem:[%s2634_s1 + $0x8] sm:$0xff] }
 0xb39   :  { %v1311_v23 = vmul.f32 %v1307_v4, %v1306_v27 }
 0xb3b   :  { %v2601_v47 = vadd.f32 %v1312_v38, %v1311_v23 }
 0xb3d   :  { %1614 = vmatmul.msk.f32.gmra.mxu0 %vm151_vm0, %v2601_v47 }
 0xba2   :  { %v1352_v33 = vpop.f32.mrf.mxu0 }
 0xba3   :  { %v1353_v34 = vadd.f32 %v1352_v33, %v1322_v32 }
 0xba5   :  { %1695 = vtanh.f32 %v1353_v34 }
 0xbaa   :  { %v1355_v40 = vpop.f32.mrf.mxu0 }
 0xbab   :  { %v1696_v28 = vpop.eup %1695  ;;  %v1356_v20 = vadd.f32 %v1355_v40, %v1322_v32 }
 0xbac   :  { %v1369_v45 = vmul.f32 %v1696_v28, %v1368_v36  ;;  %v1424_v28 = vld [vmem:[#allocation8] sm:$0x3] }
 0xbad   :  { %1697 = vtanh.f32 %v1356_v20 }
 0xbae   :  { %v1373_v25 = vsel %vm151_vm0, %v1369_v45, 0.0 }
 0xbaf   :  { %1374 = vadd.xlane.f32.xlu1 %v1373_v25 }
 0xbb2   :  { %v1358_v46 = vpop.f32.mrf.mxu0 }
 0xbb3   :  { %v1698_v8 = vpop.eup %1697  ;;  %v1359_v48 = vadd.f32 %v1358_v46, %v1322_v32 }
 0xbb4   :  { %v1370_v49 = vmul.f32 %v1698_v8, %v1368_v36 }
 0xbb5   :  { %1699 = vtanh.f32 %v1359_v48 }
 0xbb6   :  { %v1376_v51 = vsel %vm151_vm0, %v1370_v49, 0.0 }
 0xbb7   :  { %1377 = vadd.xlane.f32.xlu2 %v1376_v51 }
 0xbba   :  { %v1361_v57 = vpop.f32.mrf.mxu0 }
 0xbbb   :  { %v1700_v58 = vpop.eup %1699  ;;  %v1362_v60 = vadd.f32 %v1361_v57, %v1322_v32 }
 0xbbc   :  { %v1371_v41 = vmul.f32 %v1700_v58, %v1368_v36 }
 0xbbd   :  { %1701 = vtanh.f32 %v1362_v60 }
 0xbbe   :  { %v1379_v62 = vsel %vm151_vm0, %v1371_v41, 0.0 }
 0xbbf   :  { %1380 = vadd.xlane.f32.xlu0 %v1379_v62 }
 0xbc3   :  { %v1702_v0 = vpop.eup %1701 }
 0xbc4   :  { %v1372_v31 = vmul.f32 %v1702_v0, %v1368_v36  ;;  %v1416_v36 = vld [vmem:[%s2634_s1] sm:$0xff]  ;;  %s1903_s1 = smov [#allocation13]  }
 0xbc5   :  { %s1523_s12 = sshll.u32 %s1903_s1, 4  ;;  %s1524_s12 = int_to_ptr.vmem [resolvable:$true] %s1523_s12 }
 0xbc6   :  { %v1382_v2 = vsel %vm151_vm0, %v1372_v31, 0.0 }
 0xbc7   :  { %1383 = vadd.xlane.f32.xlu1 %v1382_v2 }
 0xc22   :  { %v1375_v6 = vpop.xlane.xlu1 %1374 }
 0xc23   :  { %v1386_v39 = vadd.f32 %v1385_v37, %v1375_v6 }
 0xc25   :  { %v1391_v19 = vsel %vm1390_vm4, %v1386_v39, -inf }
 0xc2a   :  { %v1378_v12 = vpop.xlane.xlu2 %1377 }
 0xc2b   :  { %v1387_v52 = vadd.f32 %v1385_v37, %v1378_v12 }
 0xc2d   :  { %v1392_v16 = vsel %vm1390_vm4, %v1387_v52, -inf }
 0xc2e   :  { %v1395_v59 = vmax.f32 %v1391_v19, %v1392_v16 }
 0xc32   :  { %v1381_v4 = vpop.xlane.xlu0 %1380 }
 0xc33   :  { %v1388_v10 = vadd.f32 %v1385_v37, %v1381_v4 }
 0xc35   :  { %v1393_v50 = vsel %vm1390_vm4, %v1388_v10, -inf }
 0xc3a   :  { %v1384_v38 = vpop.xlane.xlu1 %1383 }
 0xc3b   :  { %v1389_v18 = vadd.f32 %v1385_v37, %v1384_v38 }
 0xc3d   :  { %v1394_v35 = vsel %vm1390_vm4, %v1389_v18, -inf }
 0xc3e   :  { %v1396_v56 = vmax.f32 %v1393_v50, %v1394_v35 }
 0xc40   :  { %v1397_v63 = vmax.f32 %v1395_v59, %v1396_v56 }
 0xc42   :  { %v1398_v1 = vrot.slane %v1397_v63, 4 }
 0xc44   :  { %v1399_v54 = vmax.f32 %v1397_v63, %v1398_v1 }
 0xc46   :  { %v1400_v3 = vrot.slane %v1399_v54, 2 }
 0xc48   :  { %v1401_v5 = vmax.f32 %v1399_v54, %v1400_v3 }
 0xc4a   :  { %v1402_v7 = vrot.slane %v1401_v5, 1 }
 0xc4c   :  { %v1403_v22 = vmax.f32 %v1401_v5, %v1402_v7 }
 0xc4e   :  { %v1407_v9 = vsub.f32 %v1389_v18, %v1403_v22  ;;  %v1406_v55 = vsub.f32 %v1388_v10, %v1403_v22  ;;  %v1405_v13 = vsub.f32 %v1387_v52, %v1403_v22  ;;  %v1404_v42 = vsub.f32 %v1386_v39, %v1403_v22 }
 0xc4f   :  { %v1472_v57 = vsub.f32 0.0, %v1403_v22 }
 0xc50   :  { %v1414_v15 = vmul.f32 1.442695, %v1407_v9  ;;  %v1412_v17 = vmul.f32 1.442695, %v1406_v55  ;;  %v1410_v21 = vmul.f32 1.442695, %v1405_v13 }
 0xc51   :  { %v1408_v26 = vmul.f32 1.442695, %v1404_v42  ;;  %v1473_v58 = vmul.f32 1.442695, %v1472_v57 }
 0xc52   :  { %1703 = vpow2.f32 %v1414_v15 }
 0xc53   :  { %1705 = vpow2.f32 %v1412_v17 }
 0xc54   :  { %1707 = vpow2.f32 %v1410_v21 }
 0xc55   :  { %1709 = vpow2.f32 %v1408_v26 }
 0xc56   :  { %1711 = vpow2.f32 %v1473_v58 }
 0xc58   :  { %v1704_v53 = vpop.eup %1703 }
 0xc59   :  { %v1706_v27 = vpop.eup %1705  ;;  %v1423_v23 = vmul.f32 %v1704_v53, %v1419_v14 }
 0xc5a   :  { %v1708_v43 = vpop.eup %1707  ;;  %v1422_v32 = vmul.f32 %v1706_v27, %v1418_v29 }
 0xc5b   :  { %1442 = vperm.xlu2 %1632, %v1423_v23   ;;  %1488 = vmatpush.msrb.mxu3 %v1423_v23  ;;  %v1421_v33 = vmul.f32 %v1708_v43, %v1417_v30  ;;  %v1710_v34 = vpop.eup %1709 }
 0xc5c   :  { %1437 = vperm.xlu0 %1633, %v1422_v32   ;;  %v1420_v40 = vmul.f32 %v1710_v34, %v1416_v36  ;;  %v1712_v60 = vpop.eup %1711 }
 0xc5d   :  { %1432 = vperm.xlu1 %1634, %v1421_v33   ;;  %1489 = vmatpush.msrb.mxu3 %v1422_v32 }
 0xc5f   :  { %1490 = vmatpush.msrb.mxu3 %v1421_v33 }
 0xc61   :  { %1491 = vmatpush.msrb.mxu3 %v1420_v40 }
 0xc62   :  { %1616 = vmatmul.msk.f32.vlgmr.msrb.gmra.mxu3 %vm151_vm0, %v1424_v28 }
 0xc63   :  { %1427 = vperm.xlu2 %1632, %v1420_v40  }
 0xcb5   :  { %v1443_v20 = vpop.permute.xlu2 %1442 }
 0xcb6   :  { %v1448_v45 = vmul.f32 %v1443_v20, %v2601_v47  ;;  %v1475_v47 = vmul.f32 1e-08, %v1712_v60 }
 0xcb8   :  { %1464 = vmatpush.msra.mxu1 %v1448_v45 }
 0xcbd   :  { %v1428_v48 = vpop.permute.xlu2 %1427 }
 0xcbe   :  { %v1445_v51 = vmul.f32 %v1428_v48, %v2586_v61 }
 0xcce   :  { %v1438_v25 = vpop.permute.xlu0 %1437 }
 0xccf   :  { %v1447_v46 = vmul.f32 %v1438_v25, %v2596_v24  ;;  %v1433_v8 = vpop.permute.xlu1 %1432 }
 0xcd0   :  { %v1446_v49 = vmul.f32 %v1433_v8, %v2591_v11 }
 0xcd1   :  { %1465 = vmatpush.msra.mxu1 %v1447_v46 }
 0xcd3   :  { %1466 = vmatpush.msra.mxu1 %v1446_v49 }
 0xcd5   :  { %1467 = vmatpush.msra.mxu1 %v1445_v51 }
 0xcd6   :  { %1615 = vmatmul.msk.f32.vlgmr.msra.gmra.mxu1 %vm151_vm0, %v1424_v28 }
 0xce5   :  { %v1493_v41 = vpop.f32.mrf.mxu3 }
 0xce6   :  { %v1494_v62 = vadd.f32 %v1493_v41, %v1475_v47 }
 0xce8   :  { %1713 = vrcp.f32 %v1494_v62  ;;  %v1507_v2 = vand.u32 2147483648, %v1494_v62  ;;  %v1505_v6 = vand.u32 2147483647, %v1494_v62  ;;  %vm1501_vm6 = vweird.f32 %v1494_v62 }
 0xcea   :  { %v1508_v44 = vor.u32 1.1754944e-38, %v1507_v2  ;;  %vm1506_vm0 = vcmp.eq.f32.partialorder %v1505_v6, 8.507059e+37 }
 0xcee   :  { %v1714_v24 = vpop.eup %1713 }
 0xcef   :  { %v1497_v0 = vmul.f32 %v1714_v24, %v1494_v62  ;;  %vm1502_vm5 = vweird.f32 %v1714_v24 }
 0xcf0   :  { %vm1503_vm11 = vmor %vm1501_vm6, %vm1502_vm5 }
 0xcf1   :  { %v1498_v31 = vsub.f32 1.0, %v1497_v0 }
 0xcf3   :  { %v1499_v11 = vmul.f32 %v1714_v24, %v1498_v31 }
 0xcf5   :  { %v1500_v61 = vadd.f32 %v1714_v24, %v1499_v11 }
 0xcf7   :  { %v1504_v12 = vsel %vm1503_vm11, %v1714_v24, %v1500_v61 }
 0xcf8   :  { %v1509_v37 = vsel %vm1506_vm0, %v1508_v44, %v1504_v12 }
 0xcf9   :  { %1512 = vperm.xlu2 %1632, %v1509_v37  }
 0xd53   :  { %v1469_v4 = vpop.f32.mrf.mxu1  ;;  %v1513_v52 = vpop.permute.xlu2 %1512 }
 0xd54   :  { %v1515_v39 = vmul.f32 %v1513_v52, %v1469_v4 }
 0xd56   :  { %1517 = vst.msk [vmem:[#allocation13] sm:$0x3] %vm1516_vm7, %v1515_v39 }
 0xd57   :  { %1528 = dma.vmem_to_hbm [thread:$0]  %s1524_s12, 32, %s1526_s26, [#allocation4]  }
 0xd58   :  { %1891 = dma.done.wait [#allocation4], 32  }
 0xd59   :  { %1892 = vsyncadd [#allocation4], 4294967264 }
 0xd5a   :  { %1533 = vsyncpa [#allocation3], 1 }
 0xd5b   :  { %1534 = vsyncpa [#allocation6], 1 }
 0xd5c   :  { %1535 = vsyncpa [#allocation9], 1 }
 0xd5d   :  { %1536 = vsyncpa [#allocation12], 1 }
 0xd5e   :  { %1537 = vsyncpa [#allocation4], 1 }

</bundles_post_ra>
